<compile_context>
chip_gen: v7x
topology: tpu7x:2x2x1
jax: 0.10.0
libtpu: 0.0.40
codegen_flags: <defaults>
</compile_context>

<pallas_src>
import functools

import jax
import jax.numpy as jnp
from jax.experimental import pallas as pl
from jax.experimental.pallas import tpu as pltpu


def policy_net_kernel(s_ref, w1_ref, b1_ref, w2_ref, b2_ref, w3_ref, b3_ref,
                      out_ref, *, action_dim):
    # Three MXU matmuls with f32 accumulation; softmax epilogue in f32 on VPU/EUP.
    def dense(x, w_ref, b_ref):
        w = w_ref[...]  # weights may be pre-cast to bf16 in the wrapper
        return jnp.dot(x.astype(w.dtype), w,
                       preferred_element_type=jnp.float32) + b_ref[...]

    h1 = jnp.maximum(dense(s_ref[...], w1_ref, b1_ref), 0.0)
    h2 = jnp.maximum(dense(h1, w2_ref, b2_ref), 0.0)
    logits = dense(h2, w3_ref, b3_ref)                    # (tile_b, A) f32

    # Categorical(logits=...) normalization (stable logsumexp). Reuse e for
    # probs so there is a single exp per element.
    m = jnp.max(logits, axis=-1, keepdims=True)
    z = logits - m
    e = jnp.exp(z)
    denom = jnp.sum(e, axis=-1, keepdims=True)
    logp = z - jnp.log(denom)
    probs = e * pl.reciprocal(denom, approx=False)        # exact: 1e-5 tolerance

    # Lane-dense epilogue: out block is (3*A, tile_b) with tile_b a multiple of
    # 128 (when possible), so each store below is a fully unmasked vst.
    # Static ref slices are zero-cost views; the (tile_b, A) -> (A, tile_b)
    # transposes go through the otherwise-idle XLU slot.
    A = action_dim
    out_ref[0 * A:1 * A, :] = logits.T
    out_ref[1 * A:2 * A, :] = logp.T
    out_ref[2 * A:3 * A, :] = probs.T


def _pick_tile_b(batch, cap=4096):
    """Pick the batch tile.

    Prefers the largest 128-multiple divisor of `batch` (lane-dense transposed
    output stores) that still leaves >= 2 grid steps (so the 'parallel' axis
    can split across v7x's two TensorCores), capped at `cap` rows. Falls back
    to a single full-batch block when no such divisor exists.
    """
    cands = [t for t in range(128, min(batch, cap) + 1, 128) if batch % t == 0]
    two_step = [t for t in cands if t <= batch // 2]
    if two_step:
        return max(two_step)
    if cands:
        return max(cands)
    return batch  # odd/small batch: single block (stores masked but correct)


def policy_net_forward(s, params, *, tile_b=None, mxu_dtype=jnp.float32):
    """Runs the PolicyNet forward pass as one batch-tiled Pallas kernel.

    Returns (logits, log_probs, probs) — the contents of the Categorical dist.
    """
    w1, b1, w2, b2, w3, b3 = params
    B, S = s.shape
    H1 = w1.shape[1]
    H2 = w2.shape[1]
    A = w3.shape[1]

    if mxu_dtype != jnp.float32:
        # Pre-cast weights once (halves weight DMA, removes per-step casts).
        # Biases and all softmax math stay f32.
        w1, w2, w3 = (w.astype(mxu_dtype) for w in (w1, w2, w3))

    if tile_b is None:
        tile_b = _pick_tile_b(B)
    assert B % tile_b == 0, "tile_b must divide the batch"
    grid = (B // tile_b,)

    flops = 2 * B * (S * H1 + H1 * H2 + H2 * A)
    bytes_accessed = 4 * (s.size + sum(int(p.size) for p in params) + B * 3 * A)
    cost = pl.CostEstimate(flops=flops,
                           transcendentals=2 * B * A,
                           bytes_accessed=bytes_accessed)

    kernel = functools.partial(policy_net_kernel, action_dim=A)

    def resident(shape):  # weights/biases: same block every grid step -> DMA'd once
        return pl.BlockSpec(shape, lambda i: (0, 0))

    # Output is emitted transposed, (3*A, B), so the lane (last) dim is the
    # batch tile (multiple of 128) -> fully dense stores in the kernel.
    packed_t = pl.pallas_call(
        kernel,
        out_shape=jax.ShapeDtypeStruct((3 * A, B), jnp.float32),
        grid=grid,
        in_specs=[
            pl.BlockSpec((tile_b, S), lambda i: (i, 0)),  # states: streamed per tile
            resident((S, H1)), resident((1, H1)),         # layer 1 (VMEM-resident)
            resident((H1, H2)), resident((1, H2)),        # layer 2 (VMEM-resident)
            resident((H2, A)), resident((1, A)),          # layer 3 (VMEM-resident)
        ],
        out_specs=pl.BlockSpec((3 * A, tile_b), lambda i: (0, i)),
        compiler_params=pltpu.CompilerParams(
            dimension_semantics=("parallel",)),           # megacore split on v7x
        cost_estimate=cost,
    )(s, w1, b1, w2, b2, w3, b3)

    # Undo the layout plumbing in the wrapper (tiny (A, B) transposes).
    logits = packed_t[0 * A:1 * A, :].T
    log_probs = packed_t[1 * A:2 * A, :].T
    probs = packed_t[2 * A:3 * A, :].T
    return logits, log_probs, probs


def init_params(key, state_dim, action_dim, hidden=(128, 128)):
    """Deterministic init mirroring nn.Linear defaults (uniform +/- 1/sqrt(fan_in)).

    Weights are stored transposed: (in_features, out_features). Biases as
    (1, out) so every ref handed to the kernel is 2D.
    """
    dims = [state_dim, *hidden, action_dim]
    params = []
    for i in range(len(dims) - 1):
        fan_in, fan_out = dims[i], dims[i + 1]
        key, kw, kb = jax.random.split(key, 3)
        bound = 1.0 / jnp.sqrt(jnp.float32(fan_in))
        w = jax.random.uniform(kw, (fan_in, fan_out), jnp.float32, -bound, bound)
        b = jax.random.uniform(kb, (1, fan_out), jnp.float32, -bound, bound)
        params += [w, b]
    return tuple(params)


if __name__ == "__main__":
    STATE_DIM = 16
    ACTION_DIM = 8
    BATCH = 512  # _pick_tile_b(512) -> 256, grid=(2,) -> both v7x TCs get a step

    key = jax.random.PRNGKey(0)
    key, ks = jax.random.split(key)
    s = jax.random.normal(ks, (BATCH, STATE_DIM), dtype=jnp.float32)
    params = init_params(key, STATE_DIM, ACTION_DIM)

    logits, log_probs, probs = jax.block_until_ready(policy_net_forward(s, params))

    # Reference check in plain JAX (same math as torch.distributions.Categorical).
    w1, b1, w2, b2, w3, b3 = params
    h1 = jnp.maximum(s @ w1 + b1, 0.0)
    h2 = jnp.maximum(h1 @ w2 + b2, 0.0)
    ref_logits = h2 @ w3 + b3
    ref_logp = ref_logits - jax.scipy.special.logsumexp(
        ref_logits, axis=-1, keepdims=True)

    assert logits.shape == (BATCH, ACTION_DIM)
    assert log_probs.shape == (BATCH, ACTION_DIM)
    assert probs.shape == (BATCH, ACTION_DIM)
    assert jnp.allclose(logits, ref_logits, atol=1e-5), "logits mismatch"
    assert jnp.allclose(log_probs, ref_logp, atol=1e-5), "log_probs mismatch"
    assert jnp.allclose(probs, jnp.exp(ref_logp), atol=1e-5), "probs mismatch"
    assert jnp.allclose(jnp.sum(probs, axis=-1), 1.0, atol=1e-5), "probs not normalized"

    print("KERNEL_OK")
</pallas_src>

<mosaic_0001>
module attributes {stable_mosaic.version = 11 : i64} {
  func.func @policy_net_kernel(%arg0: i32, %arg1: memref<256x16xf32, #tpu.memory_space<vmem>>, %arg2: memref<16x128xf32, #tpu.memory_space<vmem>>, %arg3: memref<1x128xf32, #tpu.memory_space<vmem>>, %arg4: memref<128x128xf32, #tpu.memory_space<vmem>>, %arg5: memref<1x128xf32, #tpu.memory_space<vmem>>, %arg6: memref<128x8xf32, #tpu.memory_space<vmem>>, %arg7: memref<1x8xf32, #tpu.memory_space<vmem>>, %arg8: memref<24x256xf32, #tpu.memory_space<vmem>>) attributes {dimension_semantics = [#tpu.dimension_semantics<parallel>], iteration_bounds = array<i64: 2>, scalar_prefetch = 0 : i64, scratch_operands = 0 : i64, tpu.core_type = #tpu.core_type<tc>, window_params = [{transform_indices = @transform_0, window_bounds = array<i64: 256, 16>}, {pipeline_mode = #tpu.pipeline_mode<synchronous>, transform_indices = @transform_1, window_bounds = array<i64: 16, 128>}, {pipeline_mode = #tpu.pipeline_mode<synchronous>, transform_indices = @transform_2, window_bounds = array<i64: 1, 128>}, {pipeline_mode = #tpu.pipeline_mode<synchronous>, transform_indices = @transform_3, window_bounds = array<i64: 128, 128>}, {pipeline_mode = #tpu.pipeline_mode<synchronous>, transform_indices = @transform_4, window_bounds = array<i64: 1, 128>}, {pipeline_mode = #tpu.pipeline_mode<synchronous>, transform_indices = @transform_5, window_bounds = array<i64: 128, 8>}, {pipeline_mode = #tpu.pipeline_mode<synchronous>, transform_indices = @transform_6, window_bounds = array<i64: 1, 8>}, {transform_indices = @transform_7, window_bounds = array<i64: 24, 256>}]} {
    %c0 = arith.constant 0 : index
    %c0_0 = arith.constant 0 : index
    %0 = vector.load %arg1[%c0, %c0_0] : memref<256x16xf32, #tpu.memory_space<vmem>>, vector<256x16xf32>
    %c0_1 = arith.constant 0 : index
    %c0_2 = arith.constant 0 : index
    %1 = vector.load %arg2[%c0_1, %c0_2] : memref<16x128xf32, #tpu.memory_space<vmem>>, vector<16x128xf32>
    %cst = arith.constant dense<0.000000e+00> : vector<256x128xf32>
    %2 = tpu.matmul %0, %1, %cst {dimension_numbers = #tpu.dot_dimension_numbers<[1], [0], [0], [1], [0, 0, 1, 1], [], []>} : vector<256x16xf32>, vector<16x128xf32>, vector<256x128xf32> -> vector<256x128xf32>
    %c0_3 = arith.constant 0 : index
    %c0_4 = arith.constant 0 : index
    %3 = vector.load %arg3[%c0_3, %c0_4] : memref<1x128xf32, #tpu.memory_space<vmem>>, vector<1x128xf32>
    %4 = vector.broadcast %3 : vector<1x128xf32> to vector<256x128xf32>
    %5 = arith.addf %2, %4 : vector<256x128xf32>
    %cst_5 = arith.constant 0.000000e+00 : f32
    %6 = vector.broadcast %cst_5 : f32 to vector<256x128xf32>
    %7 = arith.maximumf %5, %6 : vector<256x128xf32>
    %c0_6 = arith.constant 0 : index
    %c0_7 = arith.constant 0 : index
    %8 = vector.load %arg4[%c0_6, %c0_7] : memref<128x128xf32, #tpu.memory_space<vmem>>, vector<128x128xf32>
    %cst_8 = arith.constant dense<0.000000e+00> : vector<256x128xf32>
    %9 = tpu.matmul %7, %8, %cst_8 {dimension_numbers = #tpu.dot_dimension_numbers<[1], [0], [0], [1], [0, 0, 1, 1], [], []>} : vector<256x128xf32>, vector<128x128xf32>, vector<256x128xf32> -> vector<256x128xf32>
    %c0_9 = arith.constant 0 : index
    %c0_10 = arith.constant 0 : index
    %10 = vector.load %arg5[%c0_9, %c0_10] : memref<1x128xf32, #tpu.memory_space<vmem>>, vector<1x128xf32>
    %11 = vector.broadcast %10 : vector<1x128xf32> to vector<256x128xf32>
    %12 = arith.addf %9, %11 : vector<256x128xf32>
    %cst_11 = arith.constant 0.000000e+00 : f32
    %13 = vector.broadcast %cst_11 : f32 to vector<256x128xf32>
    %14 = arith.maximumf %12, %13 : vector<256x128xf32>
    %c0_12 = arith.constant 0 : index
    %c0_13 = arith.constant 0 : index
    %15 = vector.load %arg6[%c0_12, %c0_13] : memref<128x8xf32, #tpu.memory_space<vmem>>, vector<128x8xf32>
    %cst_14 = arith.constant dense<0.000000e+00> : vector<256x8xf32>
    %16 = tpu.matmul %14, %15, %cst_14 {dimension_numbers = #tpu.dot_dimension_numbers<[1], [0], [0], [1], [0, 0, 1, 1], [], []>} : vector<256x128xf32>, vector<128x8xf32>, vector<256x8xf32> -> vector<256x8xf32>
    %c0_15 = arith.constant 0 : index
    %c0_16 = arith.constant 0 : index
    %17 = vector.load %arg7[%c0_15, %c0_16] : memref<1x8xf32, #tpu.memory_space<vmem>>, vector<1x8xf32>
    %18 = vector.broadcast %17 : vector<1x8xf32> to vector<256x8xf32>
    %19 = arith.addf %16, %18 : vector<256x8xf32>
    %cst_17 = arith.constant dense<0xFF800000> : vector<256xf32>
    %20 = vector.multi_reduction <maximumf>, %19, %cst_17 [1] : vector<256x8xf32> to vector<256xf32>
    %21 = vector.shape_cast %20 : vector<256xf32> to vector<256x1xf32>
    %22 = vector.broadcast %21 : vector<256x1xf32> to vector<256x8xf32>
    %23 = arith.subf %19, %22 : vector<256x8xf32>
    %24 = math.exp %23 : vector<256x8xf32>
    %cst_18 = arith.constant dense<0.000000e+00> : vector<256xf32>
    %25 = vector.multi_reduction <add>, %24, %cst_18 [1] : vector<256x8xf32> to vector<256xf32>
    %26 = vector.shape_cast %25 : vector<256xf32> to vector<256x1xf32>
    %27 = math.log %26 : vector<256x1xf32>
    %28 = vector.broadcast %27 : vector<256x1xf32> to vector<256x8xf32>
    %29 = arith.subf %23, %28 : vector<256x8xf32>
    %30 = tpu.reciprocal %26 : vector<256x1xf32> -> vector<256x1xf32>
    %31 = vector.broadcast %30 : vector<256x1xf32> to vector<256x8xf32>
    %32 = arith.mulf %24, %31 : vector<256x8xf32>
    %33 = tpu.transpose %19, [1, 0] : vector<256x8xf32> -> vector<8x256xf32>
    %c0_19 = arith.constant 0 : index
    %c0_20 = arith.constant 0 : index
    %34 = vector.load %arg8[%c0_19, %c0_20] : memref<24x256xf32, #tpu.memory_space<vmem>>, vector<8x256xf32>
    tpu.vector_store %arg8[%c0_19, %c0_20], %33 {strides = array<i32>} : memref<24x256xf32, #tpu.memory_space<vmem>>, vector<8x256xf32>,
    %35 = tpu.transpose %29, [1, 0] : vector<256x8xf32> -> vector<8x256xf32>
    %c8 = arith.constant 8 : index
    %c0_21 = arith.constant 0 : index
    %36 = vector.load %arg8[%c8, %c0_21] : memref<24x256xf32, #tpu.memory_space<vmem>>, vector<8x256xf32>
    tpu.vector_store %arg8[%c8, %c0_21], %35 {strides = array<i32>} : memref<24x256xf32, #tpu.memory_space<vmem>>, vector<8x256xf32>,
    %37 = tpu.transpose %32, [1, 0] : vector<256x8xf32> -> vector<8x256xf32>
    %c16 = arith.constant 16 : index
    %c0_22 = arith.constant 0 : index
    %38 = vector.load %arg8[%c16, %c0_22] : memref<24x256xf32, #tpu.memory_space<vmem>>, vector<8x256xf32>
    tpu.vector_store %arg8[%c16, %c0_22], %37 {strides = array<i32>} : memref<24x256xf32, #tpu.memory_space<vmem>>, vector<8x256xf32>,
    return
  }
  func.func @transform_0(%arg0: i32) -> (i32, i32) {
    %c0_i32 = arith.constant 0 : i32
    %c0_i32_0 = arith.constant 0 : i32
    return %arg0, %c0_i32 : i32, i32
  }
  func.func @transform_1(%arg0: i32) -> (i32, i32) {
    %c0_i32 = arith.constant 0 : i32
    %c0_i32_0 = arith.constant 0 : i32
    %c0_i32_1 = arith.constant 0 : i32
    return %c0_i32, %c0_i32_0 : i32, i32
  }
  func.func @transform_2(%arg0: i32) -> (i32, i32) {
    %c0_i32 = arith.constant 0 : i32
    %c0_i32_0 = arith.constant 0 : i32
    %c0_i32_1 = arith.constant 0 : i32
    return %c0_i32, %c0_i32_0 : i32, i32
  }
  func.func @transform_3(%arg0: i32) -> (i32, i32) {
    %c0_i32 = arith.constant 0 : i32
    %c0_i32_0 = arith.constant 0 : i32
    %c0_i32_1 = arith.constant 0 : i32
    return %c0_i32, %c0_i32_0 : i32, i32
  }
  func.func @transform_4(%arg0: i32) -> (i32, i32) {
    %c0_i32 = arith.constant 0 : i32
    %c0_i32_0 = arith.constant 0 : i32
    %c0_i32_1 = arith.constant 0 : i32
    return %c0_i32, %c0_i32_0 : i32, i32
  }
  func.func @transform_5(%arg0: i32) -> (i32, i32) {
    %c0_i32 = arith.constant 0 : i32
    %c0_i32_0 = arith.constant 0 : i32
    %c0_i32_1 = arith.constant 0 : i32
    return %c0_i32, %c0_i32_0 : i32, i32
  }
  func.func @transform_6(%arg0: i32) -> (i32, i32) {
    %c0_i32 = arith.constant 0 : i32
    %c0_i32_0 = arith.constant 0 : i32
    %c0_i32_1 = arith.constant 0 : i32
    return %c0_i32, %c0_i32_0 : i32, i32
  }
  func.func @transform_7(%arg0: i32) -> (i32, i32) {
    %c0_i32 = arith.constant 0 : i32
    %c0_i32_0 = arith.constant 0 : i32
    return %c0_i32, %arg0 : i32, i32
  }
}

</mosaic_0001>

<bundles_post_ra>
// kernel: tpu_custom_call.1
= control target key start
LH: loop header
LB: loop body
LE: loop exit
PB: predicated region body
PF: predicated region fallthrough
CT: control target
= control target key end

     0   :  { %12 = vsyncpa [#allocation3], 0  ;;  %s3780_s0 = inlined_call_operand.vmem [shape: f32[512,16], index: 0, kind: input, shape index: {}]   ;;  %s3781_s1 = inlined_call_operand.vmem [shape: f32[16,128], index: 1, kind: input, shape index: {}]   ;;  %s3782_s2 = inlined_call_operand.vmem [shape: f32[1,128], index: 2, kind: input, shape index: {}]   ;;  %s3783_s3 = inlined_call_operand.vmem [shape: f32[128,128], index: 3, kind: input, shape index: {}]   ;;  %s3784_s4 = inlined_call_operand.vmem [shape: f32[1,128], index: 4, kind: input, shape index: {}]   ;;  %s3785_s5 = inlined_call_operand.vmem [shape: f32[128,8], index: 5, kind: input, shape index: {}]   ;;  %s3786_s6 = inlined_call_operand.vmem [shape: f32[1,8], index: 6, kind: input, shape index: {}]   ;;  %s3787_s7 = inlined_call_operand.hbm [shape: f32[24,512], index: 7, kind: output, shape index: {}]  }
   0x1   :  { %14 = vsyncpa [#allocation3 + $0x1], 0  ;;  %s2727_s24 = smov 0   ;;  %s2729_s25 = smov 0  }
   0x2   :  { %s2731_s26 = smov 0   ;;  %s2733_s27 = smov 0  }
   0x3 LB: > { %s2748_s28 = sadd.s32 4294967295, %s2681_s27   ;;  %s1926_s29 = sadd.s32 4294967294, %s2681_s27   ;;  %s2681_s27 = sphi %s2733_s27, %s3901_s27   ;;  %s2677_s26 = sphi %s2731_s26, %s3900_s26   ;;  %s2673_s25 = sphi %s2729_s25, %s3899_s25   ;;  %s2669_s24 = sphi %s2727_s24, %s3898_s24  }
   0x4   : > { %s2752_s30 = sadd.s32 1, %s2681_s27   ;;  %s179_s8 = sadd.s32 1, %s2677_s26 }
   0x5   : > { %s176_s9 = ssub.s32 %s2681_s27, %s2752_s30  ;;  %p189_p0 = scmp.ne.s32.totalorder %s2677_s26, %s2673_s25 }
   0x6   : > { %p177_p1 = scmp.eq.s32.totalorder %s176_s9, 0  ;;  %p190_p2 = scmp.eq.s32.totalorder %s2748_s28, 1 }
   0x7   : > { %p195_p3 = scmp.ne.s32.totalorder %s2673_s25, %s2669_s24  ;;  %p196_p4 = scmp.eq.s32.totalorder %s1926_s29, 1 }
   0x8   : > { %s2763_s10 = scalar_select %p177_p1, %s2677_s26, %s179_s8  }
   0x9   : > { %p2765_p5 = por %p190_p2, %p189_p0  ;;  %p2769_p6 = por %p196_p4, %p195_p3 }
   0xa   : > { %p1929_p7 = scmp.ge.s32.totalorder %s2681_s27, 1  ;;  %p241_p8 = scmp.lt.s32.totalorder %s2681_s27, 3 }
   0xc   : > { %p242_p9 = pnand %p1929_p7, %p241_p8 }
   0xe   : > { %245 = sbr.rel (%p242_p9) target bundleno = 1355 (0x54b), region = 48 }
  0x15   : > { %v312_v0 = vld [vmem:[%s3781_s1] sm:$0xff]  ;;  %v313_v1 = vld [vmem:[%s3781_s1 + $0x8] sm:$0xff]  ;;  %s1930_s17 = sshll.u32 %s2748_s28, 5  ;;  %vm321_vm0 = vcmask 130048   ;;  %v677_v9 = vld [vmem:[%s3783_s3 + $0x10] sm:$0xff]  ;;  %vm1203_vm1 = vcmask 64512  }
  0x16   : > { %v675_v2 = vld [vmem:[%s3783_s3] sm:$0xff]  ;;  %v2314_v3 = vpack.c.bf16 %v313_v1, %v312_v0  ;;  %p274_p10 = scmp.lt.s32.totalorder %s1930_s17, 63  ;;  %v676_v4 = vld [vmem:[%s3783_s3 + $0x8] sm:$0xff]  ;;  %v678_v10 = vld [vmem:[%s3783_s3 + $0x18] sm:$0xff]  ;;  %s270_s23 = sand.u32 1, %s2673_s25  }
  0x17   : > { %v2318_v5 = vpack.c.bf16 %v676_v4, %v675_v2  ;;  %v2322_v15 = vpack.c.bf16 %v678_v10, %v677_v9  ;;  %v679_v17 = vld [vmem:[%s3783_s3 + $0x20] sm:$0xff]  ;;  %v680_v18 = vld [vmem:[%s3783_s3 + $0x28] sm:$0xff]  ;;  %v681_v24 = vld [vmem:[%s3783_s3 + $0x30] sm:$0xff]  ;;  %s2384_s29 = smul.u32 48, %s270_s23  ;;  %s1971_s14 = sshll.u32 %s2748_s28, 8 }
  0x18   : > { %2315 = vmatprep.subr.bf16.mxu0 %v2314_v3  ;;  %s3903_s17 = smov (!%p274_p10, %s1930_s17), 63  ;;  %2382 = vmatprep.subr.bf16.mxu1 %v2314_v3  ;;  %v2326_v23 = vpack.c.bf16 %v680_v18, %v679_v17  ;;  %v682_v25 = vld [vmem:[%s3783_s3 + $0x38] sm:$0xff]  ;;  %v683_v31 = vld [vmem:[%s3783_s3 + $0x40] sm:$0xff]  ;;  %v684_v32 = vld [vmem:[%s3783_s3 + $0x48] sm:$0xff]  ;;  %s2683_s28 = smov [#allocation2]  }
  0x19   : > { %2317 = vmatpush3.bf16.msra.mxu0 %v2314_v3  ;;  %2383 = vmatpush3.bf16.msra.mxu1 %v2314_v3  ;;  %s1931_s22 = sshll.u32 %s3903_s17, 3  ;;  %v2330_v30 = vpack.c.bf16 %v682_v25, %v681_v24  ;;  %v2334_v37 = vpack.c.bf16 %v684_v32, %v683_v31  ;;  %v685_v38 = vld [vmem:[%s3783_s3 + $0x50] sm:$0xff]  ;;  %v686_v39 = vld [vmem:[%s3783_s3 + $0x58] sm:$0xff]  ;;  %v687_v45 = vld [vmem:[%s3783_s3 + $0x60] sm:$0xff]  ;;  %s3395_s9 = scalar_lea.vmem [#allocation2], %s2384_s29 }
  0x1a   : > { %2319 = vmatprep.subr.bf16.mxu1 %v2318_v5  ;;  %s2791_s8 = scalar_lea.vmem %s3780_s0, %s1931_s22  ;;  %v2338_v44 = vpack.c.bf16 %v686_v39, %v685_v38  ;;  %v688_v46 = vld [vmem:[%s3783_s3 + $0x68] sm:$0xff]  ;;  %v689_v56 = vld [vmem:[%s3783_s3 + $0x70] sm:$0xff]  ;;  %v690_v57 = vld [vmem:[%s3783_s3 + $0x78] sm:$0xff]  ;;  %s1864_s13 = sshll.u32 %s3395_s9, 4  ;;  %s3729_s13 = int_to_ptr.vmem [resolvable:$true] %s1864_s13 }
  0x1b   : > { %v280_v6 = vld [vmem:[%s2791_s8] sm:$0xff]  ;;  %v281_v7 = vld [vmem:[%s2791_s8 + $0x8] sm:$0xff]  ;;  %v282_v8 = vld [vmem:[%s2791_s8 + $0x10] sm:$0xff]  ;;  %v2342_v51 = vpack.c.bf16 %v688_v46, %v687_v45  ;;  %v2346_v58 = vpack.c.bf16 %v690_v57, %v689_v56  ;;  %s3739_s17 = scalar_lea.sflag [#allocation3], %s270_s23  ;;  %s2619_s18 = scalar_lea.vmem %s3729_s13, 768 }
  0x1c   : > { %2106 = vmatprep.mubr.msk.f32.mxu0 %vm321_vm0, %v280_v6  ;;  %v283_v11 = vld [vmem:[%s2791_s8 + $0x18] sm:$0xff]  ;;  %v284_v12 = vld [vmem:[%s2791_s8 + $0x20] sm:$0xff]  ;;  %v297_v14 = vld [vmem:[%s2791_s8 + $0x88] sm:$0xff]  ;;  %p2620_p11 = scmp.ne.s32.totalorder %s3729_s13, %s2619_s18  ;;  %s2623_s19 = sshll.u32 %s2683_s28, 4  ;;  %s2624_s19 = int_to_ptr.vmem [resolvable:$false] %s2623_s19 }
  0x1d   : > { %2107 = vmatmul.mubr.msk.f32.vlgmr.msra.gmra.mrb[0].mxu0 %vm321_vm0, %v281_v7  ;;  %v296_v13 = vld [vmem:[%s2791_s8 + $0x80] sm:$0xff]  ;;  %v298_v16 = vld [vmem:[%s2791_s8 + $0x90] sm:$0xff]  ;;  %v285_v19 = vld [vmem:[%s2791_s8 + $0x28] sm:$0xff]  ;;  %s2625_s20 = scalar_lea.vmem %s2624_s19, 1536  ;;  %p2626_p0 = scmp.lt.s32.totalorder %s3729_s13, %s2624_s19 }
  0x1e   : > { %2109 = vmatprep.mubr.msk.f32.mxu0 %vm321_vm0, %v282_v8  ;;  %2130 = vmatprep.mubr.msk.f32.mxu1 %vm321_vm0, %v296_v13  ;;  %v286_v20 = vld [vmem:[%s2791_s8 + $0x30] sm:$0xff]  ;;  %v299_v21 = vld [vmem:[%s2791_s8 + $0x98] sm:$0xff]  ;;  %v300_v22 = vld [vmem:[%s2791_s8 + $0xa0] sm:$0xff]  ;;  %p2621_p12 = pnand %p2620_p11, %p2765_p5  ;;  %p2627_p1 = scmp.lt.s32.totalorder %s2625_s20, %s2619_s18 }
  0x1f   : > { %2131 = vmatmul.mubr.msk.f32.vlgmr.msra.gmra.mrb[0].mxu1 %vm321_vm0, %v297_v14  ;;  %v287_v26 = vld [vmem:[%s2791_s8 + $0x38] sm:$0xff]  ;;  %v288_v27 = vld [vmem:[%s2791_s8 + $0x40] sm:$0xff]  ;;  %v301_v28 = vld [vmem:[%s2791_s8 + $0xa8] sm:$0xff] }
  0x20   : > { %2133 = vmatprep.mubr.msk.f32.mxu1 %vm321_vm0, %v298_v16  ;;  %2321 = vmatpush3.bf16.msra.mxu1 %v2318_v5  ;;  %v302_v29 = vld [vmem:[%s2791_s8 + $0xb0] sm:$0xff]  ;;  %v289_v33 = vld [vmem:[%s2791_s8 + $0x48] sm:$0xff]  ;;  %v303_v35 = vld [vmem:[%s2791_s8 + $0xb8] sm:$0xff]  ;;  %p2622_p13 = pneg %p2621_p12  ;;  %p2628_p2 = por %p2627_p1, %p2626_p0 }
  0x21   : > { %2110 = vmatmul.mubr.msk.f32.gmra.mrb[2].mxu0 %vm321_vm0, %v283_v11  ;;  %2323 = vmatprep.subr.bf16.mxu1 %v2322_v15  ;;  %v290_v34 = vld [vmem:[%s2791_s8 + $0x50] sm:$0xff]  ;;  %v304_v36 = vld [vmem:[%s2791_s8 + $0xc0] sm:$0xff]  ;;  %v291_v40 = vld [vmem:[%s2791_s8 + $0x58] sm:$0xff] }
  0x22   : > { %2112 = vmatprep.mubr.msk.f32.mxu0 %vm321_vm0, %v284_v12  ;;  %v292_v41 = vld [vmem:[%s2791_s8 + $0x60] sm:$0xff]  ;;  %v305_v42 = vld [vmem:[%s2791_s8 + $0xc8] sm:$0xff]  ;;  %v306_v43 = vld [vmem:[%s2791_s8 + $0xd0] sm:$0xff]  ;;  %p2629_p3 = pnand %p2628_p2, %p2622_p13 }
  0x23   : > { %2134 = vmatmul.mubr.msk.f32.gmra.mrb[2].mxu1 %vm321_vm0, %v299_v21  ;;  %v293_v47 = vld [vmem:[%s2791_s8 + $0x68] sm:$0xff]  ;;  %v294_v48 = vld [vmem:[%s2791_s8 + $0x70] sm:$0xff]  ;;  %v307_v49 = vld [vmem:[%s2791_s8 + $0xd8] sm:$0xff] }
  0x24   : > { %2136 = vmatprep.mubr.msk.f32.mxu1 %vm321_vm0, %v300_v22  ;;  %2325 = vmatpush3.bf16.msra.mxu1 %v2322_v15  ;;  %v308_v50 = vld [vmem:[%s2791_s8 + $0xe0] sm:$0xff]  ;;  %v295_v52 = vld [vmem:[%s2791_s8 + $0x78] sm:$0xff]  ;;  %v309_v53 = vld [vmem:[%s2791_s8 + $0xe8] sm:$0xff] }
  0x25   : > { %2113 = vmatmul.mubr.msk.f32.gmra.mrb[4].mxu0 %vm321_vm0, %v285_v19  ;;  %2327 = vmatprep.subr.bf16.mxu1 %v2326_v23  ;;  %v310_v54 = vld [vmem:[%s2791_s8 + $0xf0] sm:$0xff]  ;;  %v311_v55 = vld [vmem:[%s2791_s8 + $0xf8] sm:$0xff]  ;;  %v955_v59 = vld [vmem:[%s3785_s5] sm:$0xff]  ;;  %s3734_s8 = scalar_lea.hbm %s3787_s7, %s1971_s14 }
  0x26   : > { %2115 = vmatprep.mubr.msk.f32.mxu0 %vm321_vm0, %v286_v20  ;;  %v956_v60 = vld [vmem:[%s3785_s5 + $0x8] sm:$0xff]  ;;  %v957_v61 = vld [vmem:[%s3785_s5 + $0x10] sm:$0xff]  ;;  %v958_v63 = vld [vmem:[%s3785_s5 + $0x18] sm:$0xff] }
  0x27   : > { %2137 = vmatmul.mubr.msk.f32.gmra.mrb[4].mxu1 %vm321_vm0, %v301_v28  ;;  %v2350_v62 = vpack.c.bf16 %v956_v60, %v955_v59  ;;  %v2354_v0 = vpack.c.bf16 %v958_v63, %v957_v61  ;;  %v959_v1 = vld [vmem:[%s3785_s5 + $0x20] sm:$0xff]  ;;  %v960_v2 = vld [vmem:[%s3785_s5 + $0x28] sm:$0xff]  ;;  %v961_v4 = vld [vmem:[%s3785_s5 + $0x30] sm:$0xff] }
  0x28   : > { %2139 = vmatprep.mubr.msk.f32.mxu1 %vm321_vm0, %v302_v29  ;;  %2329 = vmatpush3.bf16.msra.mxu1 %v2326_v23  ;;  %v2358_v3 = vpack.c.bf16 %v960_v2, %v959_v1  ;;  %v962_v5 = vld [vmem:[%s3785_s5 + $0x38] sm:$0xff]  ;;  %v963_v7 = vld [vmem:[%s3785_s5 + $0x40] sm:$0xff]  ;;  %v964_v8 = vld [vmem:[%s3785_s5 + $0x48] sm:$0xff] }
  0x29   : > { %2116 = vmatmul.mubr.msk.f32.gmra.mrb[6].mxu0 %vm321_vm0, %v287_v26  ;;  %2331 = vmatprep.subr.bf16.mxu1 %v2330_v30  ;;  %v2362_v6 = vpack.c.bf16 %v962_v5, %v961_v4  ;;  %v2366_v9 = vpack.c.bf16 %v964_v8, %v963_v7  ;;  %v965_v10 = vld [vmem:[%s3785_s5 + $0x50] sm:$0xff]  ;;  %v966_v11 = vld [vmem:[%s3785_s5 + $0x58] sm:$0xff]  ;;  %v967_v13 = vld [vmem:[%s3785_s5 + $0x60] sm:$0xff] }
  0x2a   : > { %2118 = vmatprep.mubr.msk.f32.mxu0 %vm321_vm0, %v288_v27  ;;  %2351 = vmatprep.subr.bf16.mxu0 %v2350_v62  ;;  %v2370_v12 = vpack.c.bf16 %v966_v11, %v965_v10  ;;  %v968_v14 = vld [vmem:[%s3785_s5 + $0x68] sm:$0xff]  ;;  %v2944_v16 = vld [vmem:[%s3782_s2] ss:$0 sm:$0xff] }
  0x2b   : > { %2140 = vmatmul.mubr.msk.f32.gmra.mrb[6].mxu1 %vm321_vm0, %v303_v35  ;;  %2353 = vmatpush3.bf16.msra.mxu0 %v2350_v62  ;;  %v2374_v15 = vpack.c.bf16 %v968_v14, %v967_v13 }
  0x2c   : > { %2142 = vmatprep.mubr.msk.f32.mxu1 %vm321_vm0, %v304_v36  ;;  %2333 = vmatpush3.bf16.msra.mxu1 %v2330_v30 }
  0x2d   : > { %2119 = vmatmul.mubr.msk.f32.gmra.mrb[8].mxu0 %vm321_vm0, %v289_v33  ;;  %2335 = vmatprep.subr.bf16.mxu1 %v2334_v37 }
  0x2e   : > { %2121 = vmatprep.mubr.msk.f32.mxu0 %vm321_vm0, %v290_v34  ;;  %2355 = vmatprep.subr.bf16.mxu0 %v2354_v0 }
  0x2f   : > { %2143 = vmatmul.mubr.msk.f32.gmra.mrb[8].mxu1 %vm321_vm0, %v305_v42  ;;  %2357 = vmatpush3.bf16.msra.mxu0 %v2354_v0 }
  0x30   : > { %2145 = vmatprep.mubr.msk.f32.mxu1 %vm321_vm0, %v306_v43  ;;  %2337 = vmatpush3.bf16.msra.mxu1 %v2334_v37 }
  0x31   : > { %2122 = vmatmul.mubr.msk.f32.gmra.mrb[10].mxu0 %vm321_vm0, %v291_v40  ;;  %2339 = vmatprep.subr.bf16.mxu1 %v2338_v44 }
  0x32   : > { %2124 = vmatprep.mubr.msk.f32.mxu0 %vm321_vm0, %v292_v41  ;;  %2359 = vmatprep.subr.bf16.mxu0 %v2358_v3 }
  0x33   : > { %2146 = vmatmul.mubr.msk.f32.gmra.mrb[10].mxu1 %vm321_vm0, %v307_v49  ;;  %2361 = vmatpush3.bf16.msra.mxu0 %v2358_v3 }
  0x34   : > { %2148 = vmatprep.mubr.msk.f32.mxu1 %vm321_vm0, %v308_v50  ;;  %2341 = vmatpush3.bf16.msra.mxu1 %v2338_v44 }
  0x35   : > { %2125 = vmatmul.mubr.msk.f32.gmra.mrb[12].mxu0 %vm321_vm0, %v293_v47  ;;  %2343 = vmatprep.subr.bf16.mxu1 %v2342_v51 }
  0x36   : > { %2127 = vmatprep.mubr.msk.f32.mxu0 %vm321_vm0, %v294_v48  ;;  %2363 = vmatprep.subr.bf16.mxu0 %v2362_v6 }
  0x37   : > { %2149 = vmatmul.mubr.msk.f32.gmra.mrb[12].mxu1 %vm321_vm0, %v309_v53  ;;  %2365 = vmatpush3.bf16.msra.mxu0 %v2362_v6 }
  0x38   : > { %2151 = vmatprep.mubr.msk.f32.mxu1 %vm321_vm0, %v310_v54  ;;  %2345 = vmatpush3.bf16.msra.mxu1 %v2342_v51 }
  0x39   : > { %2128 = vmatmul.mubr.msk.f32.gmra.mrb[14].mxu0 %vm321_vm0, %v295_v52  ;;  %2347 = vmatprep.subr.bf16.mxu1 %v2346_v58 }
  0x3a   : > { %2367 = vmatprep.subr.bf16.mxu0 %v2366_v9 }
  0x3b   : > { %2152 = vmatmul.mubr.msk.f32.gmra.mrb[14].mxu1 %vm321_vm0, %v311_v55  ;;  %2369 = vmatpush3.bf16.msra.mxu0 %v2366_v9 }
  0x3c   : > { %2349 = vmatpush3.bf16.msra.mxu1 %v2346_v58  ;;  %2371 = vmatprep.subr.bf16.mxu0 %v2370_v12 }
  0x3f   : > { %2373 = vmatpush3.bf16.msra.mxu0 %v2370_v12 }
  0x40   : > { %2375 = vmatprep.subr.bf16.mxu0 %v2374_v15 }
  0x43   : > { %2377 = vmatpush3.bf16.msra.mxu0 %v2374_v15 }
  0xf0   : > { %v2108_v17 = vpop.f32.mrb[0].mxu0 }
  0xf1   : > { %v490_v18 = vadd.f32 %v2108_v17, %v2944_v16  ;;  %v484_v19 = vpop.f32.mrb[1].mxu0 }
  0xf2   : > { %v485_v20 = vadd.f32 %v2944_v16, %v484_v19  ;;  %v2949_v26 = vpop.f32.mrb[0].mxu1 }
  0xf3   : > { %v644_v23 = vmax.f32 %v490_v18, 0.0  ;;  %v564_v28 = vpop.f32.mrb[1].mxu1  ;;  %v570_v19 = vadd.f32 %v2949_v26, %v2944_v16 }
  0xf4   : > { %v643_v21 = vmax.f32 %v485_v20, 0.0  ;;  %v2111_v22 = vpop.f32.mrb[2].mxu0  ;;  %v565_v7 = vadd.f32 %v2944_v16, %v564_v28 }
  0xf5   : > { %v500_v24 = vadd.f32 %v2111_v22, %v2944_v16  ;;  %v494_v25 = vpop.f32.mrb[3].mxu0 }
  0xf6   : > { %v495_v27 = vadd.f32 %v2944_v16, %v494_v25  ;;  %2186 = vmatprep.mubr.f32.mxu1 %v643_v21  ;;  %v2953_v34 = vpop.f32.mrb[2].mxu1  ;;  %v659_v15 = vmax.f32 %v565_v7, 0.0 }
  0xf7   : > { %2187 = vmatmul.mubr.f32.vlgmr.msra.gmra.mrb[16].mxu1 %v644_v23  ;;  %v646_v31 = vmax.f32 %v500_v24, 0.0  ;;  %v574_v36 = vpop.f32.mrb[3].mxu1  ;;  %v660_v24 = vmax.f32 %v570_v19, 0.0  ;;  %v580_v25 = vadd.f32 %v2953_v34, %v2944_v16 }
  0xf8   : > { %v645_v29 = vmax.f32 %v495_v27, 0.0  ;;  %v2114_v30 = vpop.f32.mrb[4].mxu0  ;;  %v575_v17 = vadd.f32 %v2944_v16, %v574_v36 }
  0xf9   : > { %v510_v32 = vadd.f32 %v2114_v30, %v2944_v16  ;;  %v504_v33 = vpop.f32.mrb[5].mxu0 }
  0xfa   : > { %v505_v35 = vadd.f32 %v2944_v16, %v504_v33  ;;  %2189 = vmatprep.mubr.f32.mxu1 %v645_v29  ;;  %v2957_v42 = vpop.f32.mrb[4].mxu1  ;;  %v661_v22 = vmax.f32 %v575_v17, 0.0  ;;  %v662_v29 = vmax.f32 %v580_v25, 0.0 }
  0xfb   : > { %2190 = vmatmul.mubr.f32.gmra.mrb[18].mxu1 %v646_v31  ;;  %v648_v39 = vmax.f32 %v510_v32, 0.0  ;;  %v584_v44 = vpop.f32.mrb[5].mxu1  ;;  %v590_v26 = vadd.f32 %v2957_v42, %v2944_v16 }
  0xfc   : > { %v647_v37 = vmax.f32 %v505_v35, 0.0  ;;  %v2117_v38 = vpop.f32.mrb[6].mxu0  ;;  %v585_v23 = vadd.f32 %v2944_v16, %v584_v44 }
  0xfd   : > { %v520_v40 = vadd.f32 %v2117_v38, %v2944_v16  ;;  %v514_v41 = vpop.f32.mrb[7].mxu0  ;;  %v664_v32 = vmax.f32 %v590_v26, 0.0 }
  0xfe   : > { %v515_v43 = vadd.f32 %v2944_v16, %v514_v41  ;;  %2192 = vmatprep.mubr.f32.mxu1 %v647_v37  ;;  %v2141_v50 = vpop.f32.mrb[6].mxu1  ;;  %v663_v27 = vmax.f32 %v585_v23, 0.0 }
  0xff   : > { %2193 = vmatmul.mubr.f32.gmra.mrb[20].mxu1 %v648_v39  ;;  %v650_v47 = vmax.f32 %v520_v40, 0.0  ;;  %v594_v52 = vpop.f32.mrb[7].mxu1  ;;  %v600_v33 = vadd.f32 %v2141_v50, %v2944_v16  ;;  %v969_v50 = vld [vmem:[%s3785_s5 + $0x70] sm:$0xff] }
 0x100   : > { %v649_v45 = vmax.f32 %v515_v43, 0.0  ;;  %v2120_v46 = vpop.f32.mrb[8].mxu0  ;;  %v595_v28 = vadd.f32 %v2944_v16, %v594_v52 }
 0x101   : > { %v530_v48 = vadd.f32 %v2120_v46, %v2944_v16  ;;  %v524_v49 = vpop.f32.mrb[9].mxu0  ;;  %v666_v36 = vmax.f32 %v600_v33, 0.0 }
 0x102   : > { %v525_v51 = vadd.f32 %v2944_v16, %v524_v49  ;;  %2195 = vmatprep.mubr.f32.mxu1 %v649_v45  ;;  %v2144_v58 = vpop.f32.mrb[8].mxu1  ;;  %v665_v30 = vmax.f32 %v595_v28, 0.0 }
 0x103   : > { %2196 = vmatmul.mubr.f32.gmra.mrb[22].mxu1 %v650_v47  ;;  %v652_v55 = vmax.f32 %v530_v48, 0.0  ;;  %v604_v60 = vpop.f32.mrb[9].mxu1  ;;  %v610_v37 = vadd.f32 %v2144_v58, %v2944_v16 }
 0x104   : > { %v651_v53 = vmax.f32 %v525_v51, 0.0  ;;  %v2123_v54 = vpop.f32.mrb[10].mxu0  ;;  %v605_v31 = vadd.f32 %v2944_v16, %v604_v60  ;;  %v970_v51 = vld [vmem:[%s3785_s5 + $0x78] sm:$0xff] }
 0x105   : > { %v540_v56 = vadd.f32 %v2123_v54, %v2944_v16  ;;  %v534_v57 = vpop.f32.mrb[11].mxu0  ;;  %v668_v40 = vmax.f32 %v610_v37, 0.0  ;;  %v2378_v52 = vpack.c.bf16 %v970_v51, %v969_v50 }
 0x106   : > { %v535_v59 = vadd.f32 %v2944_v16, %v534_v57  ;;  %2198 = vmatprep.mubr.f32.mxu1 %v651_v53  ;;  %v2147_v2 = vpop.f32.mrb[10].mxu1  ;;  %v667_v35 = vmax.f32 %v605_v31, 0.0 }
 0x107   : > { %2199 = vmatmul.mubr.f32.gmra.mrb[24].mxu1 %v652_v55  ;;  %v654_v63 = vmax.f32 %v540_v56, 0.0  ;;  %v614_v4 = vpop.f32.mrb[11].mxu1  ;;  %v620_v41 = vadd.f32 %v2147_v2, %v2944_v16  ;;  %2379 = vmatprep.subr.bf16.mxu0 %v2378_v52 }
 0x108   : > { %v653_v61 = vmax.f32 %v535_v59, 0.0  ;;  %v2126_v62 = vpop.f32.mrb[12].mxu0  ;;  %v615_v34 = vadd.f32 %v2944_v16, %v614_v4  ;;  %2381 = vmatpush3.bf16.msra.mxu0 %v2378_v52 }
 0x109   : > { %v550_v0 = vadd.f32 %v2126_v62, %v2944_v16  ;;  %v544_v1 = vpop.f32.mrb[13].mxu0  ;;  %v670_v44 = vmax.f32 %v620_v41, 0.0 }
 0x10a   : > { %v545_v3 = vadd.f32 %v2944_v16, %v544_v1  ;;  %2201 = vmatprep.mubr.f32.mxu1 %v653_v61  ;;  %v2150_v11 = vpop.f32.mrb[12].mxu1  ;;  %v669_v38 = vmax.f32 %v615_v34, 0.0 }
 0x10b   : > { %2202 = vmatmul.mubr.f32.gmra.mrb[26].mxu1 %v654_v63  ;;  %v656_v8 = vmax.f32 %v550_v0, 0.0  ;;  %v624_v13 = vpop.f32.mrb[13].mxu1  ;;  %v630_v45 = vadd.f32 %v2150_v11, %v2944_v16 }
 0x10c   : > { %v655_v5 = vmax.f32 %v545_v3, 0.0  ;;  %v2129_v6 = vpop.f32.mrb[14].mxu0  ;;  %v625_v39 = vadd.f32 %v2944_v16, %v624_v13 }
 0x10d   : > { %v560_v9 = vadd.f32 %v2129_v6, %v2944_v16  ;;  %v554_v10 = vpop.f32.mrb[15].mxu0  ;;  %v672_v48 = vmax.f32 %v630_v45, 0.0 }
 0x10e   : > { %v555_v12 = vadd.f32 %v2944_v16, %v554_v10  ;;  %2204 = vmatprep.mubr.f32.mxu1 %v655_v5  ;;  %v2153_v20 = vpop.f32.mrb[14].mxu1  ;;  %v671_v42 = vmax.f32 %v625_v39, 0.0 }
 0x10f   : > { %2205 = vmatmul.mubr.f32.gmra.mrb[28].mxu1 %v656_v8  ;;  %v658_v18 = vmax.f32 %v560_v9, 0.0  ;;  %v634_v21 = vpop.f32.mrb[15].mxu1  ;;  %v640_v46 = vadd.f32 %v2153_v20, %v2944_v16 }
 0x110   : > { %v657_v14 = vmax.f32 %v555_v12, 0.0  ;;  %v635_v43 = vadd.f32 %v2944_v16, %v634_v21  ;;  %v2996_v16 = vld [vmem:[%s3784_s4] ss:$0 sm:$0xff] }
 0x111   : > { %v674_v49 = vmax.f32 %v640_v46, 0.0 }
 0x112   : > { %2207 = vmatprep.mubr.f32.mxu1 %v657_v14  ;;  %v673_v47 = vmax.f32 %v635_v43, 0.0 }
 0x113   : > { %2208 = vmatmul.mubr.f32.gmra.mrb[30].mxu1 %v658_v18 }
 0x114   : > { %2210 = vmatprep.mubr.f32.mxu1 %v659_v15 }
 0x117   : > { %2211 = vmatmul.mubr.f32.gmra.mrb[32].mxu1 %v660_v24 }
 0x118   : > { %2213 = vmatprep.mubr.f32.mxu1 %v661_v22 }
 0x11b   : > { %2214 = vmatmul.mubr.f32.gmra.mrb[34].mxu1 %v662_v29 }
 0x11c   : > { %2216 = vmatprep.mubr.f32.mxu1 %v663_v27 }
 0x11f   : > { %2217 = vmatmul.mubr.f32.gmra.mrb[36].mxu1 %v664_v32 }
 0x120   : > { %2219 = vmatprep.mubr.f32.mxu1 %v665_v30 }
 0x123   : > { %2220 = vmatmul.mubr.f32.gmra.mrb[38].mxu1 %v666_v36 }
 0x124   : > { %2222 = vmatprep.mubr.f32.mxu1 %v667_v35 }
 0x127   : > { %2223 = vmatmul.mubr.f32.gmra.mrb[40].mxu1 %v668_v40 }
 0x128   : > { %2225 = vmatprep.mubr.f32.mxu1 %v669_v38 }
 0x12b   : > { %2226 = vmatmul.mubr.f32.gmra.mrb[42].mxu1 %v670_v44 }
 0x12c   : > { %2228 = vmatprep.mubr.f32.mxu1 %v671_v42 }
 0x12f   : > { %2229 = vmatmul.mubr.f32.gmra.mrb[44].mxu1 %v672_v48 }
 0x130   : > { %2231 = vmatprep.mubr.f32.mxu1 %v673_v47 }
 0x133   : > { %2232 = vmatmul.mubr.f32.gmra.mrb[46].mxu1 %v674_v49 }
 0x1ca   : > { %v2188_v53 = vpop.f32.mrb[16].mxu1 }
 0x1cb   : > { %v770_v54 = vadd.f32 %v2188_v53, %v2996_v16  ;;  %v764_v55 = vpop.f32.mrb[17].mxu1 }
 0x1cc   : > { %v765_v56 = vadd.f32 %v2996_v16, %v764_v55 }
 0x1cd   : > { %v924_v59 = vmax.f32 %v770_v54, 0.0 }
 0x1ce   : > { %v923_v57 = vmax.f32 %v765_v56, 0.0  ;;  %v2191_v58 = vpop.f32.mrb[18].mxu1 }
 0x1cf   : > { %v780_v60 = vadd.f32 %v2191_v58, %v2996_v16  ;;  %v774_v61 = vpop.f32.mrb[19].mxu1 }
 0x1d0   : > { %v775_v62 = vadd.f32 %v2996_v16, %v774_v61  ;;  %2266 = vmatprep.mubr.f32.mxu0 %v923_v57 }
 0x1d1   : > { %2267 = vmatmul.mubr.f32.vlgmr.msra.gmra.mrb[16].mxu0 %v924_v59  ;;  %v926_v1 = vmax.f32 %v780_v60, 0.0 }
 0x1d2   : > { %v925_v63 = vmax.f32 %v775_v62, 0.0  ;;  %v2194_v0 = vpop.f32.mrb[20].mxu1 }
 0x1d3   : > { %v790_v2 = vadd.f32 %v2194_v0, %v2996_v16  ;;  %v784_v3 = vpop.f32.mrb[21].mxu1 }
 0x1d4   : > { %v785_v4 = vadd.f32 %v2996_v16, %v784_v3  ;;  %2269 = vmatprep.mubr.f32.mxu0 %v925_v63 }
 0x1d5   : > { %2270 = vmatmul.mubr.f32.gmra.mrb[18].mxu0 %v926_v1  ;;  %v928_v7 = vmax.f32 %v790_v2, 0.0 }
 0x1d6   : > { %v927_v5 = vmax.f32 %v785_v4, 0.0  ;;  %v2197_v6 = vpop.f32.mrb[22].mxu1 }
 0x1d7   : > { %v800_v8 = vadd.f32 %v2197_v6, %v2996_v16  ;;  %v794_v9 = vpop.f32.mrb[23].mxu1 }
 0x1d8   : > { %v795_v10 = vadd.f32 %v2996_v16, %v794_v9  ;;  %2272 = vmatprep.mubr.f32.mxu0 %v927_v5 }
 0x1d9   : > { %2273 = vmatmul.mubr.f32.gmra.mrb[20].mxu0 %v928_v7  ;;  %v930_v13 = vmax.f32 %v800_v8, 0.0 }
 0x1da   : > { %v929_v11 = vmax.f32 %v795_v10, 0.0  ;;  %v2200_v12 = vpop.f32.mrb[24].mxu1 }
 0x1db   : > { %v810_v14 = vadd.f32 %v2200_v12, %v2996_v16  ;;  %v804_v15 = vpop.f32.mrb[25].mxu1 }
 0x1dc   : > { %v805_v17 = vadd.f32 %v2996_v16, %v804_v15  ;;  %2275 = vmatprep.mubr.f32.mxu0 %v929_v11 }
 0x1dd   : > { %2276 = vmatmul.mubr.f32.gmra.mrb[22].mxu0 %v930_v13  ;;  %v932_v20 = vmax.f32 %v810_v14, 0.0 }
 0x1de   : > { %v931_v18 = vmax.f32 %v805_v17, 0.0  ;;  %v2203_v19 = vpop.f32.mrb[26].mxu1 }
 0x1df   : > { %v820_v21 = vadd.f32 %v2203_v19, %v2996_v16  ;;  %v814_v22 = vpop.f32.mrb[27].mxu1 }
 0x1e0   : > { %v815_v23 = vadd.f32 %v2996_v16, %v814_v22  ;;  %2278 = vmatprep.mubr.f32.mxu0 %v931_v18 }
 0x1e1   : > { %2279 = vmatmul.mubr.f32.gmra.mrb[24].mxu0 %v932_v20  ;;  %v934_v27 = vmax.f32 %v820_v21, 0.0 }
 0x1e2   : > { %v933_v24 = vmax.f32 %v815_v23, 0.0  ;;  %v2206_v25 = vpop.f32.mrb[28].mxu1  ;;  %v3033_v23 = vld [vmem:[%s3786_s6] ss:$0 sm:$0xff] }
 0x1e3   : > { %v830_v28 = vadd.f32 %v2206_v25, %v2996_v16  ;;  %v824_v29 = vpop.f32.mrb[29].mxu1 }
 0x1e4   : > { %v825_v26 = vadd.f32 %v2996_v16, %v824_v29  ;;  %2281 = vmatprep.mubr.f32.mxu0 %v933_v24 }
 0x1e5   : > { %2282 = vmatmul.mubr.f32.gmra.mrb[26].mxu0 %v934_v27  ;;  %v936_v32 = vmax.f32 %v830_v28, 0.0 }
 0x1e6   : > { %v935_v30 = vmax.f32 %v825_v26, 0.0  ;;  %v2209_v31 = vpop.f32.mrb[30].mxu1 }
 0x1e7   : > { %v840_v33 = vadd.f32 %v2209_v31, %v2996_v16  ;;  %v834_v35 = vpop.f32.mrb[31].mxu1 }
 0x1e8   : > { %v835_v34 = vadd.f32 %v2996_v16, %v834_v35  ;;  %2284 = vmatprep.mubr.f32.mxu0 %v935_v30 }
 0x1e9   : > { %2285 = vmatmul.mubr.f32.gmra.mrb[28].mxu0 %v936_v32  ;;  %v938_v38 = vmax.f32 %v840_v33, 0.0 }
 0x1ea   : > { %v937_v36 = vmax.f32 %v835_v34, 0.0  ;;  %v2212_v37 = vpop.f32.mrb[32].mxu1 }
 0x1eb   : > { %v850_v39 = vadd.f32 %v2212_v37, %v2996_v16  ;;  %v844_v40 = vpop.f32.mrb[33].mxu1 }
 0x1ec   : > { %v845_v41 = vadd.f32 %v2996_v16, %v844_v40  ;;  %2287 = vmatprep.mubr.f32.mxu0 %v937_v36 }
 0x1ed   : > { %2288 = vmatmul.mubr.f32.gmra.mrb[30].mxu0 %v938_v38  ;;  %v940_v44 = vmax.f32 %v850_v39, 0.0 }
 0x1ee   : > { %v939_v42 = vmax.f32 %v845_v41, 0.0  ;;  %v2215_v43 = vpop.f32.mrb[34].mxu1 }
 0x1ef   : > { %v860_v45 = vadd.f32 %v2215_v43, %v2996_v16  ;;  %v854_v46 = vpop.f32.mrb[35].mxu1 }
 0x1f0   : > { %v855_v47 = vadd.f32 %v2996_v16, %v854_v46  ;;  %2290 = vmatprep.mubr.f32.mxu0 %v939_v42 }
 0x1f1   : > { %2291 = vmatmul.mubr.f32.gmra.mrb[32].mxu0 %v940_v44  ;;  %v942_v50 = vmax.f32 %v860_v45, 0.0 }
 0x1f2   : > { %v941_v48 = vmax.f32 %v855_v47, 0.0  ;;  %v2218_v49 = vpop.f32.mrb[36].mxu1 }
 0x1f3   : > { %v870_v51 = vadd.f32 %v2218_v49, %v2996_v16  ;;  %v864_v52 = vpop.f32.mrb[37].mxu1 }
 0x1f4   : > { %v865_v53 = vadd.f32 %v2996_v16, %v864_v52  ;;  %2293 = vmatprep.mubr.f32.mxu0 %v941_v48 }
 0x1f5   : > { %2294 = vmatmul.mubr.f32.gmra.mrb[34].mxu0 %v942_v50  ;;  %v944_v56 = vmax.f32 %v870_v51, 0.0 }
 0x1f6   : > { %v943_v54 = vmax.f32 %v865_v53, 0.0  ;;  %v2221_v55 = vpop.f32.mrb[38].mxu1 }
 0x1f7   : > { %v880_v57 = vadd.f32 %v2221_v55, %v2996_v16  ;;  %v874_v58 = vpop.f32.mrb[39].mxu1 }
 0x1f8   : > { %v875_v59 = vadd.f32 %v2996_v16, %v874_v58  ;;  %2296 = vmatprep.mubr.f32.mxu0 %v943_v54 }
 0x1f9   : > { %2297 = vmatmul.mubr.f32.gmra.mrb[36].mxu0 %v944_v56  ;;  %v946_v62 = vmax.f32 %v880_v57, 0.0 }
 0x1fa   : > { %v945_v60 = vmax.f32 %v875_v59, 0.0  ;;  %v2224_v61 = vpop.f32.mrb[40].mxu1 }
 0x1fb   : > { %v890_v63 = vadd.f32 %v2224_v61, %v2996_v16  ;;  %v884_v0 = vpop.f32.mrb[41].mxu1 }
 0x1fc   : > { %v885_v1 = vadd.f32 %v2996_v16, %v884_v0  ;;  %2299 = vmatprep.mubr.f32.mxu0 %v945_v60 }
 0x1fd   : > { %2300 = vmatmul.mubr.f32.gmra.mrb[38].mxu0 %v946_v62  ;;  %v948_v4 = vmax.f32 %v890_v63, 0.0 }
 0x1fe   : > { %v947_v2 = vmax.f32 %v885_v1, 0.0  ;;  %v2227_v3 = vpop.f32.mrb[42].mxu1 }
 0x1ff   : > { %v900_v5 = vadd.f32 %v2227_v3, %v2996_v16  ;;  %v894_v6 = vpop.f32.mrb[43].mxu1 }
 0x200   : > { %v895_v7 = vadd.f32 %v2996_v16, %v894_v6  ;;  %2302 = vmatprep.mubr.f32.mxu0 %v947_v2 }
 0x201   : > { %2303 = vmatmul.mubr.f32.gmra.mrb[40].mxu0 %v948_v4  ;;  %v950_v10 = vmax.f32 %v900_v5, 0.0 }
 0x202   : > { %v949_v8 = vmax.f32 %v895_v7, 0.0  ;;  %v2230_v9 = vpop.f32.mrb[44].mxu1 }
 0x203   : > { %v910_v11 = vadd.f32 %v2230_v9, %v2996_v16  ;;  %v904_v12 = vpop.f32.mrb[45].mxu1 }
 0x204   : > { %v905_v13 = vadd.f32 %v2996_v16, %v904_v12  ;;  %2305 = vmatprep.mubr.f32.mxu0 %v949_v8 }
 0x205   : > { %2306 = vmatmul.mubr.f32.gmra.mrb[42].mxu0 %v950_v10  ;;  %v952_v17 = vmax.f32 %v910_v11, 0.0 }
 0x206   : > { %v951_v14 = vmax.f32 %v905_v13, 0.0  ;;  %v2233_v15 = vpop.f32.mrb[46].mxu1 }
 0x207   : > { %v920_v18 = vadd.f32 %v2233_v15, %v2996_v16  ;;  %v914_v19 = vpop.f32.mrb[47].mxu1 }
 0x208   : > { %2308 = vmatprep.mubr.f32.mxu0 %v951_v14  ;;  %v915_v20 = vadd.f32 %v2996_v16, %v914_v19 }
 0x209   : > { %2309 = vmatmul.mubr.f32.gmra.mrb[44].mxu0 %v952_v17  ;;  %v954_v21 = vmax.f32 %v920_v18, 0.0 }
 0x20a   : > { %v953_v22 = vmax.f32 %v915_v20, 0.0 }
 0x20c   : > { %2311 = vmatprep.mubr.f32.mxu0 %v953_v22 }
 0x20d   : > { %2312 = vmatmul.mubr.f32.gmra.mrb[46].mxu0 %v954_v21 }
 0x2a4   : > { %v2268_v24 = vpop.f32.mrb[16].mxu0 }
 0x2a5   : > { %v3036_v25 = vadd.f32 %v2268_v24, %v3033_v23  ;;  %v1044_v27 = vpop.f32.mrb[17].mxu0 }
 0x2a6   : > { %v3039_v28 = vadd.f32 %v3033_v23, %v1044_v27 }
 0x2a7   : > { %v1207_v16 = vsel %vm1203_vm1, %v3036_v25, -inf }
 0x2a8   : > { %1208 = vmax.xlane.f32.xlu0 %v1207_v16  ;;  %v2271_v29 = vpop.f32.mrb[18].mxu0  ;;  %v1204_v33 = vsel %vm1203_vm1, %v3039_v28, -inf }
 0x2a9   : > { %v3044_v26 = vadd.f32 %v2271_v29, %v3033_v23  ;;  %v1054_v30 = vpop.f32.mrb[19].mxu0 }
 0x2aa   : > { %v3047_v31 = vadd.f32 %v3033_v23, %v1054_v30 }
 0x2ab   : > { %v1213_v32 = vsel %vm1203_vm1, %v3044_v26, -inf }
 0x2ac   : > { %1214 = vmax.xlane.f32.xlu1 %v1213_v32  ;;  %v2274_v35 = vpop.f32.mrb[20].mxu0  ;;  %1205 = vmax.xlane.f32.xlu0 %v1204_v33  ;;  %v1210_v38 = vsel %vm1203_vm1, %v3047_v31, -inf }
 0x2ad   : > { %v1064_v34 = vpop.f32.mrb[21].mxu0  ;;  %v3057_v37 = vadd.f32 %v2274_v35, %v3033_v23 }
 0x2ae   : > { %v3054_v36 = vadd.f32 %v3033_v23, %v1064_v34 }
 0x2af   : > { %v1219_v44 = vsel %vm1203_vm1, %v3057_v37, -inf }
 0x2b0   : > { %v2277_v39 = vpop.f32.mrb[22].mxu0  ;;  %1211 = vmax.xlane.f32.xlu1 %v1210_v38  ;;  %v1216_v40 = vsel %vm1203_vm1, %v3054_v36, -inf }
 0x2b1   : > { %v1074_v41 = vpop.f32.mrb[23].mxu0  ;;  %1217 = vmax.xlane.f32.xlu0 %v1216_v40  ;;  %v3067_v43 = vadd.f32 %v2277_v39, %v3033_v23 }
 0x2b2   : > { %v3064_v42 = vadd.f32 %v3033_v23, %v1074_v41 }
 0x2b3   : > { %v1225_v50 = vsel %vm1203_vm1, %v3067_v43, -inf }
 0x2b4   : > { %v2280_v45 = vpop.f32.mrb[24].mxu0  ;;  %1220 = vmax.xlane.f32.xlu1 %v1219_v44  ;;  %v1222_v46 = vsel %vm1203_vm1, %v3064_v42, -inf }
 0x2b5   : > { %v1084_v47 = vpop.f32.mrb[25].mxu0  ;;  %1223 = vmax.xlane.f32.xlu0 %v1222_v46  ;;  %v3077_v49 = vadd.f32 %v2280_v45, %v3033_v23 }
 0x2b6   : > { %v3074_v48 = vadd.f32 %v3033_v23, %v1084_v47 }
 0x2b7   : > { %v1231_v56 = vsel %vm1203_vm1, %v3077_v49, -inf }
 0x2b8   : > { %v2283_v51 = vpop.f32.mrb[26].mxu0  ;;  %1226 = vmax.xlane.f32.xlu1 %v1225_v50  ;;  %v1228_v52 = vsel %vm1203_vm1, %v3074_v48, -inf }
 0x2b9   : > { %v1094_v53 = vpop.f32.mrb[27].mxu0  ;;  %1229 = vmax.xlane.f32.xlu0 %v1228_v52  ;;  %v3087_v55 = vadd.f32 %v2283_v51, %v3033_v23 }
 0x2ba   : > { %v3084_v54 = vadd.f32 %v3033_v23, %v1094_v53 }
 0x2bb   : > { %v1237_v62 = vsel %vm1203_vm1, %v3087_v55, -inf }
 0x2bc   : > { %v2286_v57 = vpop.f32.mrb[28].mxu0  ;;  %1232 = vmax.xlane.f32.xlu1 %v1231_v56  ;;  %v1234_v58 = vsel %vm1203_vm1, %v3084_v54, -inf }
 0x2bd   : > { %v1104_v59 = vpop.f32.mrb[29].mxu0  ;;  %1235 = vmax.xlane.f32.xlu0 %v1234_v58  ;;  %v3097_v61 = vadd.f32 %v2286_v57, %v3033_v23 }
 0x2be   : > { %v3094_v60 = vadd.f32 %v3033_v23, %v1104_v59 }
 0x2bf   : > { %v1243_v4 = vsel %vm1203_vm1, %v3097_v61, -inf }
 0x2c0   : > { %v2289_v63 = vpop.f32.mrb[30].mxu0  ;;  %1238 = vmax.xlane.f32.xlu1 %v1237_v62  ;;  %v1240_v0 = vsel %vm1203_vm1, %v3094_v60, -inf }
 0x2c1   : > { %v1114_v1 = vpop.f32.mrb[31].mxu0  ;;  %1241 = vmax.xlane.f32.xlu0 %v1240_v0  ;;  %v3107_v3 = vadd.f32 %v2289_v63, %v3033_v23 }
 0x2c2   : > { %v3104_v2 = vadd.f32 %v3033_v23, %v1114_v1 }
 0x2c3   : > { %v1249_v10 = vsel %vm1203_vm1, %v3107_v3, -inf }
 0x2c4   : > { %v2292_v5 = vpop.f32.mrb[32].mxu0  ;;  %1244 = vmax.xlane.f32.xlu1 %v1243_v4  ;;  %v1246_v6 = vsel %vm1203_vm1, %v3104_v2, -inf }
 0x2c5   : > { %v1124_v7 = vpop.f32.mrb[33].mxu0  ;;  %1247 = vmax.xlane.f32.xlu0 %v1246_v6  ;;  %v3117_v9 = vadd.f32 %v2292_v5, %v3033_v23 }
 0x2c6   : > { %v3114_v8 = vadd.f32 %v3033_v23, %v1124_v7 }
 0x2c7   : > { %v1255_v17 = vsel %vm1203_vm1, %v3117_v9, -inf }
 0x2c8   : > { %v2295_v11 = vpop.f32.mrb[34].mxu0  ;;  %1250 = vmax.xlane.f32.xlu1 %v1249_v10  ;;  %v1252_v12 = vsel %vm1203_vm1, %v3114_v8, -inf }
 0x2c9   : > { %v1134_v13 = vpop.f32.mrb[35].mxu0  ;;  %1253 = vmax.xlane.f32.xlu0 %v1252_v12  ;;  %v3127_v15 = vadd.f32 %v2295_v11, %v3033_v23 }
 0x2ca   : > { %v3124_v14 = vadd.f32 %v3033_v23, %v1134_v13 }
 0x2cb   : > { %v1261_v24 = vsel %vm1203_vm1, %v3127_v15, -inf }
 0x2cc   : > { %v2298_v18 = vpop.f32.mrb[36].mxu0  ;;  %1256 = vmax.xlane.f32.xlu1 %v1255_v17  ;;  %v1258_v19 = vsel %vm1203_vm1, %v3124_v14, -inf }
 0x2cd   : > { %v1144_v20 = vpop.f32.mrb[37].mxu0  ;;  %1259 = vmax.xlane.f32.xlu0 %v1258_v19  ;;  %v3137_v22 = vadd.f32 %v2298_v18, %v3033_v23 }
 0x2ce   : > { %v3134_v21 = vadd.f32 %v3033_v23, %v1144_v20 }
 0x2cf   : > { %v1267_v33 = vsel %vm1203_vm1, %v3137_v22, -inf }
 0x2d0   : > { %v2301_v27 = vpop.f32.mrb[38].mxu0  ;;  %1262 = vmax.xlane.f32.xlu1 %v1261_v24  ;;  %v1264_v16 = vsel %vm1203_vm1, %v3134_v21, -inf }
 0x2d1   : > { %v1154_v29 = vpop.f32.mrb[39].mxu0  ;;  %1265 = vmax.xlane.f32.xlu0 %v1264_v16  ;;  %v3147_v32 = vadd.f32 %v2301_v27, %v3033_v23 }
 0x2d2   : > { %v3144_v30 = vadd.f32 %v3033_v23, %v1154_v29 }
 0x2d3   : > { %v1273_v41 = vsel %vm1203_vm1, %v3147_v32, -inf }
 0x2d4   : > { %v2304_v35 = vpop.f32.mrb[40].mxu0  ;;  %1268 = vmax.xlane.f32.xlu1 %v1267_v33  ;;  %v1270_v34 = vsel %vm1203_vm1, %v3144_v30, -inf }
 0x2d5   : > { %v1164_v38 = vpop.f32.mrb[41].mxu0  ;;  %1271 = vmax.xlane.f32.xlu0 %v1270_v34  ;;  %v3157_v40 = vadd.f32 %v2304_v35, %v3033_v23 }
 0x2d6   : > { %v3154_v39 = vadd.f32 %v3033_v23, %v1164_v38 }
 0x2d7   : > { %v1279_v51 = vsel %vm1203_vm1, %v3157_v40, -inf }
 0x2d8   : > { %v2307_v44 = vpop.f32.mrb[42].mxu0  ;;  %1274 = vmax.xlane.f32.xlu1 %v1273_v41  ;;  %v1276_v45 = vsel %vm1203_vm1, %v3154_v39, -inf }
 0x2d9   : > { %v1174_v46 = vpop.f32.mrb[43].mxu0  ;;  %1277 = vmax.xlane.f32.xlu0 %v1276_v45  ;;  %v3167_v50 = vadd.f32 %v2307_v44, %v3033_v23 }
 0x2da   : > { %v3164_v47 = vadd.f32 %v3033_v23, %v1174_v46 }
 0x2db   : > { %v1285_v59 = vsel %vm1203_vm1, %v3167_v50, -inf }
 0x2dc   : > { %v2310_v52 = vpop.f32.mrb[44].mxu0  ;;  %1280 = vmax.xlane.f32.xlu1 %v1279_v51  ;;  %v1282_v53 = vsel %vm1203_vm1, %v3164_v47, -inf }
 0x2dd   : > { %v1184_v56 = vpop.f32.mrb[45].mxu0  ;;  %1283 = vmax.xlane.f32.xlu0 %v1282_v53  ;;  %v3177_v58 = vadd.f32 %v2310_v52, %v3033_v23 }
 0x2de   : > { %v3174_v57 = vadd.f32 %v3033_v23, %v1184_v56 }
 0x2df   : > { %v1291_v5 = vsel %vm1203_vm1, %v3177_v58, -inf }
 0x2e0   : > { %1286 = vmax.xlane.f32.xlu1 %v1285_v59  ;;  %v1288_v62 = vsel %vm1203_vm1, %v3174_v57, -inf  ;;  %v2313_v63 = vpop.f32.mrb[46].mxu0 }
 0x2e1   : > { %1289 = vmax.xlane.f32.xlu0 %v1288_v62  ;;  %v3184_v0 = vadd.f32 %v2313_v63, %v3033_v23  ;;  %v1194_v1 = vpop.f32.mrb[47].mxu0 }
 0x2e2   : > { %v3187_v4 = vadd.f32 %v3033_v23, %v1194_v1 }
 0x2e3   : > { %v1297_v6 = vsel %vm1203_vm1, %v3184_v0, -inf }
 0x2e4   : > { %1292 = vmax.xlane.f32.xlu1 %v1291_v5 }
 0x2e8   : > { %1298 = vmax.xlane.f32.xlu1 %v1297_v6 }
 0x30e   : > { %1652 = vxpose.xlu0.b32.start [1/16] (narrow) %v3039_v28, 8 }
 0x312   : > { %1653 = vxpose.xlu0.b32.cont [2/16] (narrow) %v3036_v25, 8 }
 0x316   : > { %1654 = vxpose.xlu0.b32.cont [3/16] (narrow) %v3047_v31, 8 }
 0x31a   : > { %1655 = vxpose.xlu0.b32.cont [4/16] (narrow) %v3044_v26, 8 }
 0x31b   : > { %1684 = vxpose.xlu1.b32.start [1/16] (narrow) %v3114_v8, 8 }
 0x31e   : > { %1656 = vxpose.xlu0.b32.cont [5/16] (narrow) %v3054_v36, 8 }
 0x31f   : > { %1685 = vxpose.xlu1.b32.cont [2/16] (narrow) %v3117_v9, 8 }
 0x322   : > { %1657 = vxpose.xlu0.b32.cont [6/16] (narrow) %v3057_v37, 8 }
 0x323   : > { %1686 = vxpose.xlu1.b32.cont [3/16] (narrow) %v3124_v14, 8 }
 0x326   : > { %1658 = vxpose.xlu0.b32.cont [7/16] (narrow) %v3064_v42, 8 }
 0x327   : > { %1687 = vxpose.xlu1.b32.cont [4/16] (narrow) %v3127_v15, 8 }
 0x32a   : > { %1659 = vxpose.xlu0.b32.cont [8/16] (narrow) %v3067_v43, 8 }
 0x32b   : > { %1688 = vxpose.xlu1.b32.cont [5/16] (narrow) %v3134_v21, 8 }
 0x32e   : > { %1660 = vxpose.xlu0.b32.cont [9/16] (narrow) %v3074_v48, 8 }
 0x32f   : > { %1689 = vxpose.xlu1.b32.cont [6/16] (narrow) %v3137_v22, 8 }
 0x332   : > { %1661 = vxpose.xlu0.b32.cont [10/16] (narrow) %v3077_v49, 8 }
 0x333   : > { %1690 = vxpose.xlu1.b32.cont [7/16] (narrow) %v3144_v30, 8 }
 0x335   : > { %v1209_v23 = vpop.xlane.xlu0 %1208 }
 0x336   : > { %1662 = vxpose.xlu0.b32.cont [11/16] (narrow) %v3084_v54, 8  ;;  %v3235_v41 = vsub.f32 %v3036_v25, %v1209_v23 }
 0x337   : > { %1691 = vxpose.xlu1.b32.cont [8/16] (narrow) %v3147_v32, 8 }
 0x338   : > { %v1334_v46 = vmul.f32 1.442695, %v3235_v41 }
 0x339   : > { %v1206_v7 = vpop.xlane.xlu0 %1205  ;;  %v1215_v10 = vpop.xlane.xlu1 %1214 }
 0x33a   : > { %1663 = vxpose.xlu0.b32.cont [12/16] (narrow) %v3087_v55, 8  ;;  %v3228_v35 = vsub.f32 %v3039_v28, %v1206_v7  ;;  %v3243_v51 = vsub.f32 %v3044_v26, %v1215_v10 }
 0x33b   : > { %1692 = vxpose.xlu1.b32.cont [9/16] (narrow) %v3154_v39, 8 }
 0x33c   : > { %v1332_v44 = vmul.f32 1.442695, %v3228_v35  ;;  %v1338_v56 = vmul.f32 1.442695, %v3243_v51 }
 0x33d   : > { %v1212_v12 = vpop.xlane.xlu1 %1211 }
 0x33e   : > { %1664 = vxpose.xlu0.b32.cont [13/16] (narrow) %v3094_v60, 8  ;;  %v1218_v11 = vpop.xlane.xlu0 %1217  ;;  %v3239_v45 = vsub.f32 %v3047_v31, %v1212_v12  ;;  %2427 = vpow2.f32 %v1332_v44 }
 0x33f   : > { %1693 = vxpose.xlu1.b32.cont [10/16] (narrow) %v3157_v40, 8  ;;  %v3249_v53 = vsub.f32 %v3054_v36, %v1218_v11  ;;  %2429 = vpow2.f32 %v1334_v46 }
 0x340   : > { %v1336_v28 = vmul.f32 1.442695, %v3239_v45 }
 0x341   : > { %v1221_v17 = vpop.xlane.xlu1 %1220  ;;  %v1340_v26 = vmul.f32 1.442695, %v3249_v53 }
 0x342   : > { %1665 = vxpose.xlu0.b32.cont [14/16] (narrow) %v3097_v61, 8  ;;  %v1224_v13 = vpop.xlane.xlu0 %1223  ;;  %v3255_v31 = vsub.f32 %v3057_v37, %v1221_v17  ;;  %2431 = vpow2.f32 %v1336_v28 }
 0x343   : > { %1694 = vxpose.xlu1.b32.cont [11/16] (narrow) %v3164_v47, 8  ;;  %v3259_v59 = vsub.f32 %v3064_v42, %v1224_v13  ;;  %2433 = vpow2.f32 %v1338_v56  ;;  %v1294_v42 = vsel %vm1203_vm1, %v3187_v4, -inf }
 0x344   : > { %v1342_v36 = vmul.f32 1.442695, %v3255_v31  ;;  %2435 = vpow2.f32 %v1340_v26 }
 0x345   : > { %v1227_v19 = vpop.xlane.xlu1 %1226  ;;  %v1344_v37 = vmul.f32 1.442695, %v3259_v59 }
 0x346   : > { %1666 = vxpose.xlu0.b32.cont [15/16] (narrow) %v3104_v2, 8  ;;  %v1230_v18 = vpop.xlane.xlu0 %1229  ;;  %v3267_v1 = vsub.f32 %v3067_v43, %v1227_v19  ;;  %2437 = vpow2.f32 %v1342_v36 }
 0x347   : > { %1695 = vxpose.xlu1.b32.cont [12/16] (narrow) %v3167_v50, 8  ;;  %v3271_v5 = vsub.f32 %v3074_v48, %v1230_v18  ;;  %2439 = vpow2.f32 %v1344_v37 }
 0x348   : > { %v3275_v6 = vpop.eup %2427  ;;  %v1346_v23 = vmul.f32 1.442695, %v3267_v1 }
 0x349   : > { %v1233_v24 = vpop.xlane.xlu1 %1232  ;;  %v1348_v10 = vmul.f32 1.442695, %v3271_v5  ;;  %v3289_v12 = vpop.eup %2429  ;;  %v1396_v13 = vsel %vm1203_vm1, %v3275_v6, 0.0 }
 0x34a   : > { %1667 = vxpose.xlu0.b32.end [16/16] (narrow) %v3107_v3, 8  ;;  %v1236_v20 = vpop.xlane.xlu0 %1235  ;;  %v3279_v7 = vsub.f32 %v3077_v49, %v1233_v24  ;;  %2441 = vpow2.f32 %v1346_v23 }
 0x34b   : > { %1696 = vxpose.xlu1.b32.cont [13/16] (narrow) %v3174_v57, 8  ;;  %v3285_v48 = vsub.f32 %v3084_v54, %v1236_v20  ;;  %2443 = vpow2.f32 %v1348_v10  ;;  %v1399_v20 = vsel %vm1203_vm1, %v3289_v12, 0.0 }
 0x34c   : > { %v3293_v17 = vpop.eup %2431  ;;  %v1350_v49 = vmul.f32 1.442695, %v3279_v7 }
 0x34d   : > { %v1239_v16 = vpop.xlane.xlu1 %1238  ;;  %v1352_v54 = vmul.f32 1.442695, %v3285_v48  ;;  %v3305_v24 = vpop.eup %2433  ;;  %v1402_v46 = vsel %vm1203_vm1, %v3293_v17, 0.0 }
 0x34e   : > { %v1242_v27 = vpop.xlane.xlu0 %1241  ;;  %v3297_v18 = vsub.f32 %v3087_v55, %v1239_v16  ;;  %v3311_v28 = vpop.eup %2435  ;;  %2445 = vpow2.f32 %v1350_v49  ;;  %v1405_v26 = vsel %vm1203_vm1, %v3305_v24, 0.0 }
 0x34f   : > { %1697 = vxpose.xlu1.b32.cont [14/16] (narrow) %v3177_v58, 8  ;;  %v3301_v19 = vsub.f32 %v3094_v60, %v1242_v27  ;;  %2447 = vpow2.f32 %v1352_v54  ;;  %v1408_v37 = vsel %vm1203_vm1, %v3311_v28, 0.0 }
 0x350   : > { %v1354_v60 = vmul.f32 1.442695, %v3297_v18  ;;  %v3326_v36 = vpop.eup %2437 }
 0x351   : > { %v1245_v33 = vpop.xlane.xlu1 %1244  ;;  %v1356_v16 = vmul.f32 1.442695, %v3301_v19  ;;  %3826 = vst [vmem:[#allocation5_spill] sm:$0xff] %v3326_v36 }
 0x352   : > { %v3225_v29 = vpop.xlane.xlu0 %1247  ;;  %v3317_v27 = vsub.f32 %v3097_v61, %v1245_v33  ;;  %2449 = vpow2.f32 %v1354_v60 }
 0x353   : > { %1698 = vxpose.xlu1.b32.cont [15/16] (narrow) %v3187_v4, 8  ;;  %v3322_v56 = vsub.f32 %v3104_v2, %v3225_v29  ;;  %2451 = vpow2.f32 %v1356_v16 }
 0x354   : > { %v1358_v61 = vmul.f32 1.442695, %v3317_v27 }
 0x355   : > { %v3232_v38 = vpop.xlane.xlu1 %1250  ;;  %v1360_v33 = vmul.f32 1.442695, %v3322_v56 }
 0x356   : > { %v3230_v34 = vpop.xlane.xlu0 %1253  ;;  %v3335_v2 = vsub.f32 %v3107_v3, %v3232_v38  ;;  %2453 = vpow2.f32 %v1358_v61 }
 0x357   : > { %1699 = vxpose.xlu1.b32.end [16/16] (narrow) %v3184_v0, 8  ;;  %v3342_v23 = vsub.f32 %v3114_v8, %v3230_v34  ;;  %2455 = vpow2.f32 %v1360_v33 }
 0x358   : > { %v1362_v54 = vmul.f32 1.442695, %v3335_v2 }
 0x359   : > { %v3251_v25 = vpop.xlane.xlu1 %1256  ;;  %v1364_v34 = vmul.f32 1.442695, %v3342_v23 }
 0x35a   : > { %v3245_v52 = vpop.xlane.xlu0 %1259  ;;  %v3358_v8 = vsub.f32 %v3117_v9, %v3251_v25  ;;  %2457 = vpow2.f32 %v1362_v54 }
 0x35b   : > { %2459 = vpow2.f32 %v1364_v34 }
 0x35d   : > { %v3263_v63 = vpop.xlane.xlu1 %1262 }
 0x35e   : > { %v3261_v62 = vpop.xlane.xlu0 %1265 }
 0x35f   : > { %v3385_v61 = vsub.f32 %v3134_v21, %v3261_v62 }
 0x361   : > { %v3287_v11 = vpop.xlane.xlu1 %1268  ;;  %v1372_v62 = vmul.f32 1.442695, %v3385_v61 }
 0x362   : > { %v3281_v43 = vpop.xlane.xlu0 %1271  ;;  %v3401_v21 = vsub.f32 %v3137_v22, %v3287_v11 }
 0x364   : > { %v1374_v22 = vmul.f32 1.442695, %v3401_v21 }
 0x365   : > { %v3313_v55 = vpop.xlane.xlu1 %1274 }
 0x366   : > { %v3307_v44 = vpop.xlane.xlu0 %1277 }
 0x367   : > { %v3424_v11 = vsub.f32 %v3154_v39, %v3307_v44 }
 0x369   : > { %v3344_v10 = vpop.xlane.xlu1 %1280  ;;  %v1380_v44 = vmul.f32 1.442695, %v3424_v11 }
 0x36a   : > { %v3337_v29 = vpop.xlane.xlu0 %1283  ;;  %v3437_v39 = vsub.f32 %v3157_v40, %v3344_v10 }
 0x36c   : > { %v1382_v10 = vmul.f32 1.442695, %v3437_v39 }
 0x36e   : > { %v3371_v16 = vpop.xlane.xlu0 %1289 }
 0x377   : > { %1295 = vmax.xlane.f32.xlu0 %v1294_v42  ;;  %v3330_v42 = vpop.eup %2439 }
 0x378   : > { %3827 = vst [vmem:[#allocation6_spill] sm:$0xff] %v3330_v42  ;;  %v3349_v49 = vpop.eup %2441  ;;  %v1414_v3 = vsel %vm1203_vm1, %v3330_v42, 0.0 }
 0x379   : > { %3828 = vst [vmem:[#allocation7_spill] sm:$0xff] %v3349_v49  ;;  %v3353_v38 = vpop.eup %2443 }
 0x37a   : > { %3829 = vst [vmem:[#allocation8_spill] sm:$0xff] %v3353_v38  ;;  %v3369_v60 = vpop.eup %2445  ;;  %v1420_v9 = vsel %vm1203_vm1, %v3353_v38, 0.0 }
 0x37b   : > { %1397 = vadd.xlane.f32.xlu0 %v1396_v13  ;;  %v1411_v13 = vsel %vm1203_vm1, %v3326_v36, 0.0  ;;  %3830 = vst [vmem:[#allocation9_spill] sm:$0xff] %v3369_v60  ;;  %v3375_v25 = vpop.eup %2447  ;;  %v1423_v33 = vsel %vm1203_vm1, %v3369_v60, 0.0 }
 0x37c   : > { %3831 = vst [vmem:[#allocation10_spill] sm:$0xff] %v3375_v25 }
 0x37e   : > { %1400 = vadd.xlane.f32.xlu1 %v1399_v20  ;;  %v3365_v20 = vsub.f32 %v3124_v14, %v3245_v52  ;;  %v3380_v14 = vsub.f32 %v3127_v15, %v3263_v63  ;;  %v3406_v63 = vsub.f32 %v3144_v30, %v3281_v43  ;;  %v3419_v30 = vsub.f32 %v3147_v32, %v3313_v55 }
 0x37f   : > { %1403 = vadd.xlane.f32.xlu0 %v1402_v46  ;;  %v1417_v46 = vsel %vm1203_vm1, %v3349_v49, 0.0 }
 0x380   : > { %v1368_v52 = vmul.f32 1.442695, %v3365_v20  ;;  %v1370_v15 = vmul.f32 1.442695, %v3380_v14  ;;  %v1376_v43 = vmul.f32 1.442695, %v3406_v63 }
 0x381   : > { %v1378_v55 = vmul.f32 1.442695, %v3419_v30 }
 0x382   : > { %1406 = vadd.xlane.f32.xlu1 %v1405_v26  ;;  %v1287_v26 = vpop.xlane.xlu1 %1286 }
 0x383   : > { %1409 = vadd.xlane.f32.xlu0 %v1408_v37  ;;  %v1366_v37 = vmul.f32 1.442695, %v3358_v8 }
 0x385   : > { %2461 = vpow2.f32 %v1366_v37 }
 0x386   : > { %1412 = vadd.xlane.f32.xlu1 %v1411_v13  ;;  %v3389_v13 = vpop.eup %2449  ;;  %2463 = vpow2.f32 %v1368_v52  ;;  %v1293_v34 = vpop.xlane.xlu1 %1292 }
 0x387   : > { %1415 = vadd.xlane.f32.xlu0 %v1414_v3  ;;  %3832 = vst [vmem:[#allocation11_spill] sm:$0xff] %v3389_v13  ;;  %v1426_v3 = vsel %vm1203_vm1, %v3375_v25, 0.0  ;;  %2465 = vpow2.f32 %v1370_v15 }
 0x388   : > { %2467 = vpow2.f32 %v1372_v62  ;;  %v3442_v62 = vsub.f32 %v3164_v47, %v3337_v29  ;;  %v3460_v29 = vsub.f32 %v3174_v57, %v3371_v16 }
 0x389   : > { %2469 = vpow2.f32 %v1374_v22 }
 0x38a   : > { %1418 = vadd.xlane.f32.xlu1 %v1417_v46  ;;  %v3393_v46 = vpop.eup %2451  ;;  %v1299_v32 = vpop.xlane.xlu1 %1298  ;;  %2471 = vpow2.f32 %v1376_v43  ;;  %v3454_v43 = vsub.f32 %v3167_v50, %v1287_v26  ;;  %v1384_v47 = vmul.f32 1.442695, %v3442_v62  ;;  %v3472_v26 = vsub.f32 %v3177_v58, %v1293_v34 }
 0x38b   : > { %1421 = vadd.xlane.f32.xlu0 %v1420_v9  ;;  %3833 = vst [vmem:[#allocation12_spill] sm:$0xff] %v3393_v46  ;;  %v1429_v9 = vsel %vm1203_vm1, %v3389_v13, 0.0  ;;  %v1432_v37 = vsel %vm1203_vm1, %v3393_v46, 0.0  ;;  %2473 = vpow2.f32 %v1378_v55  ;;  %v1388_v57 = vmul.f32 1.442695, %v3460_v29 }
 0x38c   : > { %2475 = vpow2.f32 %v1380_v44  ;;  %v1386_v50 = vmul.f32 1.442695, %v3454_v43  ;;  %v3485_v58 = vsub.f32 %v3184_v0, %v1299_v32 }
 0x38d   : > { %2477 = vpow2.f32 %v1382_v10  ;;  %v1390_v10 = vmul.f32 1.442695, %v3472_v26 }
 0x38e   : > { %1424 = vadd.xlane.f32.xlu1 %v1423_v33  ;;  %v1668_v54 = vpop.trf.xlu0  ;;  %v3410_v33 = vpop.eup %2453  ;;  %2479 = vpow2.f32 %v1384_v47  ;;  %3844 = vst [vmem:[#allocation23_spill] sm:$0xff] %v3485_v58 }
 0x38f   : > { %1427 = vadd.xlane.f32.xlu0 %v1426_v3  ;;  %1716 = vst [vmem:[%s3395_s9] sm:$0xff] %v1668_v54  ;;  %3834 = vst [vmem:[#allocation13_spill] sm:$0xff] %v3410_v33  ;;  %v3414_v3 = vpop.eup %2455  ;;  %v1435_v52 = vsel %vm1203_vm1, %v3410_v33, 0.0  ;;  %2481 = vpow2.f32 %v1386_v50  ;;  %v1394_v50 = vmul.f32 1.442695, %v3485_v58 }
 0x390   : > { %3835 = vst [vmem:[#allocation14_spill] sm:$0xff] %v3414_v3  ;;  %v3428_v54 = vpop.eup %2457  ;;  %v1438_v15 = vsel %vm1203_vm1, %v3414_v3, 0.0  ;;  %2483 = vpow2.f32 %v1388_v57 }
 0x391   : > { %3836 = vst [vmem:[#allocation15_spill] sm:$0xff] %v3428_v54  ;;  %2485 = vpow2.f32 %v1390_v10 }
 0x392   : > { %1430 = vadd.xlane.f32.xlu1 %v1429_v9  ;;  %v3432_v9 = vpop.eup %2459  ;;  %2487 = vpow2.f32 %v1394_v50 }
 0x393   : > { %1433 = vadd.xlane.f32.xlu0 %v1432_v37  ;;  %3837 = vst [vmem:[#allocation16_spill] sm:$0xff] %v3432_v9  ;;  %v1441_v37 = vsel %vm1203_vm1, %v3428_v54, 0.0  ;;  %v1444_v22 = vsel %vm1203_vm1, %v3432_v9, 0.0 }
 0x396   : > { %1436 = vadd.xlane.f32.xlu1 %v1435_v52  ;;  %v3446_v52 = vpop.eup %2461 }
 0x397   : > { %1439 = vadd.xlane.f32.xlu0 %v1438_v15  ;;  %3838 = vst [vmem:[#allocation17_spill] sm:$0xff] %v3446_v52  ;;  %v3450_v15 = vpop.eup %2463 }
 0x398   : > { %3839 = vst [vmem:[#allocation18_spill] sm:$0xff] %v3450_v15  ;;  %v3464_v54 = vpop.eup %2465  ;;  %v1450_v55 = vsel %vm1203_vm1, %v3450_v15, 0.0 }
 0x399   : > { %3840 = vst [vmem:[#allocation19_spill] sm:$0xff] %v3464_v54  ;;  %v1453_v16 = vsel %vm1203_vm1, %v3464_v54, 0.0 }
 0x39a   : > { %1442 = vadd.xlane.f32.xlu1 %v1441_v37  ;;  %v1447_v37 = vsel %vm1203_vm1, %v3446_v52, 0.0 }
 0x39b   : > { %1445 = vadd.xlane.f32.xlu0 %v1444_v22  ;;  %v1700_v40 = vpop.trf.xlu1  ;;  %v3468_v22 = vpop.eup %2467 }
 0x39c   : > { %1717 = vst [vmem:[%s3395_s9 + $0x8] sm:$0xff] %v1700_v40  ;;  %3841 = vst [vmem:[#allocation20_spill] sm:$0xff] %v3468_v22  ;;  %v3477_v44 = vpop.eup %2469  ;;  %v1456_v40 = vsel %vm1203_vm1, %v3468_v22, 0.0 }
 0x39d   : > { %3842 = vst [vmem:[#allocation21_spill] sm:$0xff] %v3477_v44  ;;  %v1459_v34 = vsel %vm1203_vm1, %v3477_v44, 0.0 }
 0x39e   : > { %1448 = vadd.xlane.f32.xlu1 %v1447_v37  ;;  %v3481_v37 = vpop.eup %2471 }
 0x39f   : > { %1451 = vadd.xlane.f32.xlu0 %v1450_v55  ;;  %3843 = vst [vmem:[#allocation22_spill] sm:$0xff] %v3481_v37  ;;  %v3489_v47 = vpop.eup %2473  ;;  %v1462_v55 = vsel %vm1203_vm1, %v3481_v37, 0.0 }
 0x3a0   : > { %3845 = vst [vmem:[#allocation24_spill] sm:$0xff] %v3489_v47  ;;  %v1465_v0 = vsel %vm1203_vm1, %v3489_v47, 0.0 }
 0x3a2   : > { %1454 = vadd.xlane.f32.xlu1 %v1453_v16  ;;  %v3493_v16 = vpop.eup %2475 }
 0x3a3   : > { %1457 = vadd.xlane.f32.xlu0 %v1456_v40  ;;  %3846 = vst [vmem:[#allocation25_spill] sm:$0xff] %v3493_v16  ;;  %v3498_v32 = vpop.eup %2477  ;;  %v1468_v57 = vsel %vm1203_vm1, %v3493_v16, 0.0 }
 0x3a4   : > { %3847 = vst [vmem:[#allocation26_spill] sm:$0xff] %v3498_v32  ;;  %v3502_v40 = vpop.eup %2479 }
 0x3a5   : > { %3848 = vst [vmem:[#allocation27_spill] sm:$0xff] %v3502_v40  ;;  %v1474_v10 = vsel %vm1203_vm1, %v3502_v40, 0.0 }
 0x3a6   : > { %1460 = vadd.xlane.f32.xlu1 %v1459_v34  ;;  %v1471_v34 = vsel %vm1203_vm1, %v3498_v32, 0.0 }
 0x3a7   : > { %1463 = vadd.xlane.f32.xlu0 %v1462_v55  ;;  %v3506_v55 = vpop.eup %2481 }
 0x3a8   : > { %3849 = vst [vmem:[#allocation28_spill] sm:$0xff] %v3506_v55  ;;  %v3510_v47 = vpop.eup %2483 }
 0x3a9   : > { %3850 = vst [vmem:[#allocation29_spill] sm:$0xff] %v3510_v47  ;;  %v3514_v16 = vpop.eup %2485  ;;  %v1480_v50 = vsel %vm1203_vm1, %v3510_v47, 0.0 }
 0x3aa   : > { %1466 = vadd.xlane.f32.xlu1 %v1465_v0  ;;  %v1477_v0 = vsel %vm1203_vm1, %v3506_v55, 0.0  ;;  %3851 = vst [vmem:[#allocation30_spill] sm:$0xff] %v3514_v16 }
 0x3ab   : > { %1469 = vadd.xlane.f32.xlu0 %v1468_v57  ;;  %v1483_v57 = vsel %vm1203_vm1, %v3514_v16, 0.0 }
 0x3ae   : > { %1472 = vadd.xlane.f32.xlu1 %v1471_v34  ;;  %v3520_v34 = vpop.eup %2487 }
 0x3af   : > { %1475 = vadd.xlane.f32.xlu0 %v1474_v10  ;;  %3852 = vst [vmem:[#allocation31_spill] sm:$0xff] %v3520_v34  ;;  %v1489_v40 = vsel %vm1203_vm1, %v3520_v34, 0.0 }
 0x3b2   : > { %1478 = vadd.xlane.f32.xlu1 %v1477_v0 }
 0x3b3   : > { %1481 = vadd.xlane.f32.xlu0 %v1480_v50 }
 0x3b6   : > { %1484 = vadd.xlane.f32.xlu1 %v1483_v57 }
 0x3ba   : > { %1490 = vadd.xlane.f32.xlu1 %v1489_v40 }
 0x404   : > { %v1296_v10 = vpop.xlane.xlu0 %1295 }
 0x405   : > { %v3525_v55 = vsub.f32 %v3187_v4, %v1296_v10 }
 0x407   : > { %3853 = vst [vmem:[#allocation32_spill] sm:$0xff] %v3525_v55  ;;  %v1392_v0 = vmul.f32 1.442695, %v3525_v55 }
 0x408   : > { %v3528_v32 = vpop.xlane.xlu0 %1397 }
 0x409   : > { %2489 = vpow2.f32 %v1392_v0 }
 0x40b   : > { %v3530_v50 = vpop.xlane.xlu1 %1400 }
 0x40c   : > { %v3532_v47 = vpop.xlane.xlu0 %1403 }
 0x40f   : > { %v3534_v16 = vpop.xlane.xlu1 %1406 }
 0x410   : > { %v3536_v57 = vpop.xlane.xlu0 %1409 }
 0x413   : > { %v3538_v37 = vpop.eup %2489  ;;  %v3540_v40 = vpop.xlane.xlu1 %1412 }
 0x414   : > { %3854 = vst [vmem:[#allocation33_spill] sm:$0xff] %v3538_v37  ;;  %v3542_v34 = vpop.xlane.xlu0 %1415  ;;  %v1486_v4 = vsel %vm1203_vm1, %v3538_v37, 0.0 }
 0x415   : > { %1487 = vadd.xlane.f32.xlu0 %v1486_v4 }
 0x417   : > { %v3546_v10 = vpop.xlane.xlu1 %1418 }
 0x418   : > { %v3548_v0 = vpop.xlane.xlu0 %1421 }
 0x41b   : > { %v3550_v44 = vpop.xlane.xlu1 %1424 }
 0x41c   : > { %v3552_v22 = vpop.xlane.xlu0 %1427 }
 0x41f   : > { %v3554_v54 = vpop.xlane.xlu1 %1430 }
 0x420   : > { %v3556_v15 = vpop.xlane.xlu0 %1433 }
 0x423   : > { %v3558_v52 = vpop.xlane.xlu1 %1436 }
 0x424   : > { %v3560_v9 = vpop.xlane.xlu0 %1439 }
 0x427   : > { %v3562_v3 = vpop.xlane.xlu1 %1442 }
 0x428   : > { %v3564_v37 = vpop.xlane.xlu0 %1445 }
 0x429   : > { %3855 = vst [vmem:[#allocation34_spill] sm:$0xff] %v3564_v37  ;;  %2491 = vlog2.f32 %v3564_v37 }
 0x42b   : > { %v3567_v4 = vpop.xlane.xlu1 %1448 }
 0x42c   : > { %3856 = vst [vmem:[#allocation35_spill] sm:$0xff] %v3567_v4  ;;  %2493 = vlog2.f32 %v3567_v4  ;;  %v3570_v33 = vpop.xlane.xlu0 %1451 }
 0x42d   : > { %3857 = vst [vmem:[#allocation36_spill] sm:$0xff] %v3570_v33  ;;  %2495 = vlog2.f32 %v3570_v33 }
 0x42e   : > { %2497 = vlog2.f32 %v3528_v32 }
 0x42f   : > { %v3574_v58 = vpop.xlane.xlu1 %1454 }
 0x430   : > { %3858 = vst [vmem:[#allocation37_spill] sm:$0xff] %v3574_v58  ;;  %2499 = vlog2.f32 %v3574_v58  ;;  %v3578_v46 = vpop.xlane.xlu0 %1457 }
 0x431   : > { %2501 = vlog2.f32 %v3530_v50  ;;  %3859 = vst [vmem:[#allocation38_spill] sm:$0xff] %v3578_v46 }
 0x432   : > { %2503 = vlog2.f32 %v3578_v46 }
 0x433   : > { %v2492_v55 = vpop.eup %2491  ;;  %2505 = vlog2.f32 %v3532_v47  ;;  %v3582_v25 = vpop.xlane.xlu1 %1460 }
 0x434   : > { %v1525_v13 = vmul.f32 0.6931472, %v2492_v55  ;;  %3860 = vst [vmem:[#allocation39_spill] sm:$0xff] %v3582_v25  ;;  %2507 = vlog2.f32 %v3582_v25  ;;  %v3588_v49 = vpop.xlane.xlu0 %1463 }
 0x435   : > { %2509 = vlog2.f32 %v3534_v16  ;;  %3861 = vst [vmem:[#allocation40_spill] sm:$0xff] %v3588_v49 }
 0x436   : > { %v2494_v37 = vpop.eup %2493  ;;  %v1572_v33 = vsub.f32 %v3342_v23, %v1525_v13  ;;  %2511 = vlog2.f32 %v3588_v49 }
 0x437   : > { %v1527_v4 = vmul.f32 0.6931472, %v2494_v37  ;;  %v2496_v60 = vpop.eup %2495  ;;  %2513 = vlog2.f32 %v3536_v57 }
 0x438   : > { %v2498_v38 = vpop.eup %2497  ;;  %1750 = vxpose.xlu1.b32.start [1/16] (narrow) %v1572_v33, 8  ;;  %v1529_v55 = vmul.f32 0.6931472, %v2496_v60  ;;  %v3599_v49 = vpop.xlane.xlu0 %1469 }
 0x439   : > { %v1573_v58 = vsub.f32 %v3358_v8, %v1527_v4  ;;  %v1493_v42 = vmul.f32 0.6931472, %v2498_v38  ;;  %v3593_v8 = vpop.xlane.xlu1 %1466 }
 0x43a   : > { %v2500_v46 = vpop.eup %2499  ;;  %v1574_v23 = vsub.f32 %v3365_v20, %v1529_v55  ;;  %2515 = vlog2.f32 %v3593_v8 }
 0x43b   : > { %v2502_v36 = vpop.eup %2501  ;;  %v1531_v13 = vmul.f32 0.6931472, %v2500_v46  ;;  %v1556_v4 = vsub.f32 %v3228_v35, %v1493_v42  ;;  %2517 = vlog2.f32 %v3540_v40 }
 0x43c   : > { %1751 = vxpose.xlu1.b32.cont [2/16] (narrow) %v1573_v58, 8  ;;  %v2504_v33 = vpop.eup %2503  ;;  %v1495_v37 = vmul.f32 0.6931472, %v2502_v36  ;;  %2519 = vlog2.f32 %v3599_v49 }
 0x43d   : > { %v2506_v60 = vpop.eup %2505  ;;  %v1575_v38 = vsub.f32 %v3380_v14, %v1531_v13  ;;  %v1533_v58 = vmul.f32 0.6931472, %v2504_v33  ;;  %2521 = vlog2.f32 %v3542_v34  ;;  %v3605_v42 = vpop.xlane.xlu1 %1472 }
 0x43e   : > { %v2508_v20 = vpop.eup %2507  ;;  %v1557_v46 = vsub.f32 %v3235_v41, %v1495_v37  ;;  %v1497_v55 = vmul.f32 0.6931472, %v2506_v60  ;;  %2523 = vlog2.f32 %v3605_v42 }
 0x43f   : > { %v2510_v25 = vpop.eup %2509  ;;  %v1576_v35 = vsub.f32 %v3385_v61, %v1533_v58  ;;  %v1535_v36 = vmul.f32 0.6931472, %v2508_v20  ;;  %2525 = vlog2.f32 %v3546_v10 }
 0x440   : > { %1752 = vxpose.xlu1.b32.cont [3/16] (narrow) %v1574_v23, 8  ;;  %v2512_v14 = vpop.eup %2511  ;;  %v1558_v23 = vsub.f32 %v3239_v45, %v1497_v55  ;;  %v1499_v13 = vmul.f32 0.6931472, %v2510_v25 }
 0x441   : > { %v2514_v33 = vpop.eup %2513  ;;  %v1577_v41 = vsub.f32 %v3401_v21, %v1535_v36  ;;  %v1537_v37 = vmul.f32 0.6931472, %v2512_v14  ;;  %v3617_v20 = vpop.xlane.xlu1 %1478 }
 0x442   : > { %1718 = vxpose.xlu0.b32.start [1/16] (narrow) %v1556_v4, 8  ;;  %v3611_v4 = vpop.xlane.xlu0 %1475  ;;  %v1559_v60 = vsub.f32 %v3243_v51, %v1499_v13 }
 0x443   : > { %2527 = vlog2.f32 %v3611_v4  ;;  %v1578_v45 = vsub.f32 %v3406_v63, %v1537_v37 }
 0x444   : > { %1753 = vxpose.xlu1.b32.cont [4/16] (narrow) %v1575_v38, 8  ;;  %v2516_v61 = vpop.eup %2515  ;;  %v1501_v38 = vmul.f32 0.6931472, %v2514_v33  ;;  %2529 = vlog2.f32 %v3548_v0 }
 0x445   : > { %v2518_v58 = vpop.eup %2517  ;;  %v1539_v25 = vmul.f32 0.6931472, %v2516_v61  ;;  %2531 = vlog2.f32 %v3617_v20  ;;  %v3629_v37 = vpop.xlane.xlu1 %1484 }
 0x446   : > { %1719 = vxpose.xlu0.b32.cont [2/16] (narrow) %v1557_v46, 8  ;;  %v2520_v21 = vpop.eup %2519  ;;  %v1560_v46 = vsub.f32 %v3249_v53, %v1501_v38  ;;  %v1503_v55 = vmul.f32 0.6931472, %v2518_v58  ;;  %2533 = vlog2.f32 %v3550_v44  ;;  %v3623_v14 = vpop.xlane.xlu0 %1481 }
 0x447   : > { %v1579_v51 = vsub.f32 %v3419_v30, %v1539_v25  ;;  %v1541_v36 = vmul.f32 0.6931472, %v2520_v21  ;;  %2535 = vlog2.f32 %v3623_v14 }
 0x448   : > { %1754 = vxpose.xlu1.b32.cont [5/16] (narrow) %v1576_v35, 8  ;;  %v2522_v35 = vpop.eup %2521  ;;  %2537 = vlog2.f32 %v3552_v22 }
 0x449   : > { %v2524_v63 = vpop.eup %2523  ;;  %v1505_v13 = vmul.f32 0.6931472, %v2522_v35  ;;  %v1580_v53 = vsub.f32 %v3424_v11, %v1541_v36  ;;  %2539 = vlog2.f32 %v3629_v37 }
 0x44a   : > { %1720 = vxpose.xlu0.b32.cont [3/16] (narrow) %v1558_v23, 8  ;;  %v1561_v23 = vsub.f32 %v3255_v31, %v1503_v55  ;;  %v2526_v33 = vpop.eup %2525  ;;  %2541 = vlog2.f32 %v3554_v54 }
 0x44b   : > { %v1562_v61 = vsub.f32 %v3259_v59, %v1505_v13  ;;  %2543 = vlog2.f32 %v3556_v15 }
 0x44c   : > { %1755 = vxpose.xlu1.b32.cont [6/16] (narrow) %v1577_v41, 8  ;;  %v1543_v41 = vmul.f32 0.6931472, %v2524_v63  ;;  %2545 = vlog2.f32 %v3558_v52 }
 0x44d   : > { %v2528_v30 = vpop.eup %2527  ;;  %2547 = vlog2.f32 %v3560_v9 }
 0x44e   : > { %1721 = vxpose.xlu0.b32.cont [4/16] (narrow) %v1559_v60, 8  ;;  %v1507_v60 = vmul.f32 0.6931472, %v2526_v33  ;;  %v2530_v38 = vpop.eup %2529  ;;  %v1581_v31 = vsub.f32 %v3437_v39, %v1543_v41  ;;  %v1545_v58 = vmul.f32 0.6931472, %v2528_v30  ;;  %2549 = vlog2.f32 %v3562_v3 }
 0x44f   : > { %v1509_v25 = vmul.f32 0.6931472, %v2530_v38  ;;  %2551 = vrcp.f32 %v3528_v32 }
 0x450   : > { %1756 = vxpose.xlu1.b32.cont [7/16] (narrow) %v1578_v45, 8  ;;  %v2532_v45 = vpop.eup %2531  ;;  %v1563_v11 = vsub.f32 %v3267_v1, %v1507_v60  ;;  %v1582_v59 = vsub.f32 %v3442_v62, %v1545_v58  ;;  %2553 = vrcp.f32 %v3530_v50 }
 0x451   : > { %v2534_v21 = vpop.eup %2533  ;;  %v1564_v35 = vsub.f32 %v3271_v5, %v1509_v25  ;;  %2555 = vrcp.f32 %v3532_v47 }
 0x452   : > { %1722 = vxpose.xlu0.b32.cont [5/16] (narrow) %v1560_v46, 8  ;;  %v1547_v46 = vmul.f32 0.6931472, %v2532_v45  ;;  %v2536_v55 = vpop.eup %2535  ;;  %2557 = vrcp.f32 %v3534_v16 }
 0x453   : > { %v2538_v36 = vpop.eup %2537  ;;  %v1549_v39 = vmul.f32 0.6931472, %v2536_v55  ;;  %2559 = vrcp.f32 %v3536_v57 }
 0x454   : > { %1757 = vxpose.xlu1.b32.cont [8/16] (narrow) %v1579_v51, 8  ;;  %v1511_v51 = vmul.f32 0.6931472, %v2534_v21  ;;  %v1583_v1 = vsub.f32 %v3454_v43, %v1547_v46  ;;  %v2540_v63 = vpop.eup %2539  ;;  %v1513_v13 = vmul.f32 0.6931472, %v2538_v36  ;;  %2561 = vrcp.f32 %v3540_v40 }
 0x455   : > { %v2542_v33 = vpop.eup %2541  ;;  %v1584_v5 = vsub.f32 %v3460_v29, %v1549_v39  ;;  %v1551_v62 = vmul.f32 0.6931472, %v2540_v63  ;;  %2563 = vrcp.f32 %v3542_v34  ;;  %v3868_v63 = vld [vmem:[#allocation34_spill] sm:$0xff] }
 0x456   : > { %1723 = vxpose.xlu0.b32.cont [6/16] (narrow) %v1561_v23, 8  ;;  %v1565_v23 = vsub.f32 %v3279_v7, %v1511_v51  ;;  %v1515_v41 = vmul.f32 0.6931472, %v2542_v33  ;;  %v2544_v30 = vpop.eup %2543  ;;  %2565 = vrcp.f32 %v3546_v10 }
 0x457   : > { %v1585_v43 = vsub.f32 %v3472_v26, %v1551_v62  ;;  %v2546_v60 = vpop.eup %2545  ;;  %2567 = vrcp.f32 %v3548_v0  ;;  %v3865_v0 = vld [vmem:[#allocation8_spill] sm:$0xff] }
 0x458   : > { %1758 = vxpose.xlu1.b32.cont [9/16] (narrow) %v1580_v53, 8  ;;  %v1566_v53 = vsub.f32 %v3285_v48, %v1513_v13  ;;  %v1567_v7 = vsub.f32 %v3297_v18, %v1515_v41  ;;  %v1519_v29 = vmul.f32 0.6931472, %v2546_v60  ;;  %2569 = vrcp.f32 %v3550_v44  ;;  %v3869_v13 = vld [vmem:[#allocation11_spill] sm:$0xff]  ;;  %v3871_v41 = vld [vmem:[#allocation32_spill] sm:$0xff] }
 0x459   : > { %2571 = vrcp.f32 %v3552_v22  ;;  %v3866_v22 = vld [vmem:[#allocation9_spill] sm:$0xff] }
 0x45a   : > { %1724 = vxpose.xlu0.b32.cont [7/16] (narrow) %v1562_v61, 8  ;;  %v1517_v61 = vmul.f32 0.6931472, %v2544_v30  ;;  %v1569_v48 = vsub.f32 %v3317_v27, %v1519_v29  ;;  %2573 = vrcp.f32 %v3554_v54  ;;  %v3867_v54 = vld [vmem:[#allocation10_spill] sm:$0xff] }
 0x45b   : > { %2575 = vrcp.f32 %v3556_v15 }
 0x45c   : > { %1759 = vxpose.xlu1.b32.cont [10/16] (narrow) %v1581_v31, 8  ;;  %v1568_v38 = vsub.f32 %v3301_v19, %v1517_v61  ;;  %v2548_v31 = vpop.eup %2547  ;;  %v3873_v61 = vld [vmem:[#allocation36_spill] sm:$0xff] }
 0x45d   : > { %v1521_v58 = vmul.f32 0.6931472, %v2548_v31  ;;  %v2550_v45 = vpop.eup %2549  ;;  %v3875_v31 = vld [vmem:[#allocation13_spill] sm:$0xff] }
 0x45e   : > { %1725 = vxpose.xlu0.b32.cont [8/16] (narrow) %v1563_v11, 8  ;;  %v1523_v26 = vmul.f32 0.6931472, %v2550_v45  ;;  %v2552_v11 = vpop.eup %2551 }
 0x45f   : > { %v1570_v18 = vsub.f32 %v3322_v56, %v1521_v58  ;;  %v1620_v32 = vmul.f32 %v2552_v11, %v3275_v6  ;;  %v2554_v27 = vpop.eup %2553  ;;  %v3876_v58 = vld [vmem:[#allocation37_spill] sm:$0xff] }
 0x460   : > { %1760 = vxpose.xlu1.b32.cont [11/16] (narrow) %v1582_v59, 8  ;;  %v1571_v19 = vsub.f32 %v3335_v2, %v1523_v26  ;;  %v1621_v50 = vmul.f32 %v2554_v27, %v3289_v12  ;;  %v2556_v25 = vpop.eup %2555  ;;  %v3862_v12 = vld [vmem:[#allocation5_spill] sm:$0xff]  ;;  %v3879_v27 = vld [vmem:[#allocation38_spill] sm:$0xff] }
 0x461   : > { %v1622_v56 = vmul.f32 %v2556_v25, %v3293_v17  ;;  %v2558_v47 = vpop.eup %2557  ;;  %v3863_v17 = vld [vmem:[#allocation6_spill] sm:$0xff] }
 0x462   : > { %1726 = vxpose.xlu0.b32.cont [9/16] (narrow) %v1564_v35, 8  ;;  %v1623_v2 = vmul.f32 %v2558_v47, %v3305_v24  ;;  %v2560_v16 = vpop.eup %2559  ;;  %v3864_v24 = vld [vmem:[#allocation7_spill] sm:$0xff] }
 0x463   : > { %v1624_v6 = vmul.f32 %v2560_v16, %v3311_v28  ;;  %v2562_v57 = vpop.eup %2561  ;;  %v3672_v28 = vpop.xlane.xlu1 %1490  ;;  %v3882_v16 = vld [vmem:[#allocation39_spill] sm:$0xff] }
 0x464   : > { %1761 = vxpose.xlu1.b32.cont [12/16] (narrow) %v1583_v1, 8  ;;  %v1625_v40 = vmul.f32 %v2562_v57, %v3862_v12  ;;  %v2564_v21 = vpop.eup %2563  ;;  %2577 = vlog2.f32 %v3672_v28 }
 0x465   : > { %v1626_v34 = vmul.f32 %v2564_v21, %v3863_v17  ;;  %v2566_v59 = vpop.eup %2565  ;;  %v3884_v21 = vld [vmem:[#allocation40_spill] sm:$0xff]  ;;  %v3885_v17 = vld [vmem:[#allocation19_spill] sm:$0xff] }
 0x466   : > { %1727 = vxpose.xlu0.b32.cont [10/16] (narrow) %v1565_v23, 8  ;;  %v1627_v10 = vmul.f32 %v2566_v59, %v3864_v24  ;;  %v2568_v46 = vpop.eup %2567  ;;  %v3886_v24 = vld [vmem:[#allocation20_spill] sm:$0xff] }
 0x467   : > { %v1628_v55 = vmul.f32 %v2568_v46, %v3865_v0  ;;  %v2570_v35 = vpop.eup %2569  ;;  %v3887_v0 = vld [vmem:[#allocation21_spill] sm:$0xff] }
 0x468   : > { %1762 = vxpose.xlu1.b32.cont [13/16] (narrow) %v1584_v5, 8  ;;  %v1629_v51 = vmul.f32 %v2570_v35, %v3866_v22  ;;  %v2572_v36 = vpop.eup %2571  ;;  %v3888_v22 = vld [vmem:[#allocation22_spill] sm:$0xff] }
 0x469   : > { %v1630_v1 = vmul.f32 %v2572_v36, %v3867_v54  ;;  %v2574_v39 = vpop.eup %2573  ;;  %v3889_v54 = vld [vmem:[#allocation24_spill] sm:$0xff] }
 0x46a   : > { %1728 = vxpose.xlu0.b32.cont [11/16] (narrow) %v1566_v53, 8  ;;  %v2576_v15 = vpop.eup %2575  ;;  %v1631_v33 = vmul.f32 %v2574_v39, %v3869_v13  ;;  %v3870_v53 = vld [vmem:[#allocation35_spill] sm:$0xff]  ;;  %v3890_v39 = vld [vmem:[#allocation25_spill] sm:$0xff] }
 0x46b   : > { %v3892_v13 = vld [vmem:[#allocation27_spill] sm:$0xff] }
 0x46c   : > { %1763 = vxpose.xlu1.b32.cont [14/16] (narrow) %v1585_v43, 8  ;;  %v3872_v43 = vld [vmem:[#allocation12_spill] sm:$0xff] }
 0x46e   : > { %1729 = vxpose.xlu0.b32.cont [12/16] (narrow) %v1567_v7, 8  ;;  %v2578_v23 = vpop.eup %2577  ;;  %v1632_v7 = vmul.f32 %v2576_v15, %v3872_v43 }
 0x472   : > { %1730 = vxpose.xlu0.b32.cont [13/16] (narrow) %v1568_v38, 8  ;;  %v3874_v38 = vld [vmem:[#allocation23_spill] sm:$0xff] }
 0x476   : > { %1731 = vxpose.xlu0.b32.cont [14/16] (narrow) %v1569_v48, 8 }
 0x47a   : > { %1732 = vxpose.xlu0.b32.cont [15/16] (narrow) %v1570_v18, 8  ;;  %v3877_v18 = vld [vmem:[#allocation14_spill] sm:$0xff] }
 0x47e   : > { %1733 = vxpose.xlu0.b32.end [16/16] (narrow) %v1571_v19, 8  ;;  %v3878_v19 = vld [vmem:[#allocation16_spill] sm:$0xff] }
 0x482   : > { %1784 = vxpose.xlu0.b32.start [1/16] (narrow) %v1620_v32, 8 }
 0x486   : > { %1785 = vxpose.xlu0.b32.cont [2/16] (narrow) %v1621_v50, 8  ;;  %v3880_v50 = vld [vmem:[#allocation15_spill] sm:$0xff] }
 0x48a   : > { %1786 = vxpose.xlu0.b32.cont [3/16] (narrow) %v1622_v56, 8  ;;  %v3881_v56 = vld [vmem:[#allocation17_spill] sm:$0xff] }
 0x48e   : > { %1787 = vxpose.xlu0.b32.cont [4/16] (narrow) %v1623_v2, 8 }
 0x492   : > { %1788 = vxpose.xlu0.b32.cont [5/16] (narrow) %v1624_v6, 8  ;;  %v3883_v6 = vld [vmem:[#allocation18_spill] sm:$0xff] }
 0x496   : > { %1789 = vxpose.xlu0.b32.cont [6/16] (narrow) %v1625_v40, 8 }
 0x49a   : > { %1790 = vxpose.xlu0.b32.cont [7/16] (narrow) %v1626_v34, 8 }
 0x49e   : > { %1791 = vxpose.xlu0.b32.cont [8/16] (narrow) %v1627_v10, 8 }
 0x4a2   : > { %1792 = vxpose.xlu0.b32.cont [9/16] (narrow) %v1628_v55, 8  ;;  %v3677_v44 = vpop.xlane.xlu0 %1487 }
 0x4a3   : > { %2579 = vlog2.f32 %v3677_v44 }
 0x4a4   : > { %2581 = vrcp.f32 %v3558_v52  ;;  %v1555_v52 = vmul.f32 0.6931472, %v2578_v23 }
 0x4a5   : > { %2583 = vrcp.f32 %v3560_v9 }
 0x4a6   : > { %1793 = vxpose.xlu0.b32.cont [10/16] (narrow) %v1629_v51, 8  ;;  %2585 = vrcp.f32 %v3868_v63  ;;  %v1587_v29 = vsub.f32 %v3874_v38, %v1555_v52  ;;  %v3891_v63 = vld [vmem:[#allocation26_spill] sm:$0xff] }
 0x4a7   : > { %2587 = vrcp.f32 %v3562_v3 }
 0x4a8   : > { %2589 = vrcp.f32 %v3870_v53 }
 0x4a9   : > { %2591 = vrcp.f32 %v3873_v61 }
 0x4aa   : > { %1794 = vxpose.xlu0.b32.cont [11/16] (narrow) %v1630_v1, 8  ;;  %2593 = vrcp.f32 %v3876_v58 }
 0x4ab   : > { %2595 = vrcp.f32 %v3879_v27 }
 0x4ac   : > { %2597 = vrcp.f32 %v3882_v16 }
 0x4ad   : > { %v2580_v5 = vpop.eup %2579  ;;  %2599 = vrcp.f32 %v3884_v21 }
 0x4ae   : > { %v1553_v62 = vmul.f32 0.6931472, %v2580_v5  ;;  %1795 = vxpose.xlu0.b32.cont [12/16] (narrow) %v1631_v33, 8  ;;  %v2582_v9 = vpop.eup %2581  ;;  %2601 = vrcp.f32 %v3593_v8  ;;  %v3893_v5 = vld [vmem:[#allocation28_spill] sm:$0xff] }
 0x4af   : > { %v2584_v60 = vpop.eup %2583  ;;  %v1633_v48 = vmul.f32 %v2582_v9, %v3875_v31  ;;  %2603 = vrcp.f32 %v3599_v49  ;;  %v3897_v9 = vld [vmem:[#allocation31_spill] sm:$0xff] }
 0x4b0   : > { %v1586_v30 = vsub.f32 %v3871_v41, %v1553_v62  ;;  %v2586_v3 = vpop.eup %2585  ;;  %v1634_v26 = vmul.f32 %v2584_v60, %v3877_v18  ;;  %2605 = vrcp.f32 %v3605_v42 }
 0x4b1   : > { %v2588_v45 = vpop.eup %2587  ;;  %v1636_v11 = vmul.f32 %v2586_v3, %v3878_v19  ;;  %2607 = vrcp.f32 %v3611_v4 }
 0x4b2   : > { %1796 = vxpose.xlu0.b32.cont [13/16] (narrow) %v1632_v7, 8  ;;  %1764 = vxpose.xlu1.b32.cont [15/16] (narrow) %v1586_v30, 8  ;;  %v2590_v32 = vpop.eup %2589  ;;  %v1635_v25 = vmul.f32 %v2588_v45, %v3880_v50  ;;  %2609 = vrcp.f32 %v3617_v20 }
 0x4b3   : > { %v1637_v47 = vmul.f32 %v2590_v32, %v3881_v56  ;;  %v2592_v2 = vpop.eup %2591  ;;  %2611 = vrcp.f32 %v3623_v14  ;;  %v3894_v14 = vld [vmem:[#allocation29_spill] sm:$0xff] }
 0x4b4   : > { %v1638_v57 = vmul.f32 %v2592_v2, %v3883_v6  ;;  %v2594_v12 = vpop.eup %2593  ;;  %2613 = vrcp.f32 %v3629_v37  ;;  %v3895_v37 = vld [vmem:[#allocation30_spill] sm:$0xff] }
 0x4b5   : > { %v1639_v34 = vmul.f32 %v2594_v12, %v3885_v17  ;;  %v2596_v59 = vpop.eup %2595  ;;  %2615 = vrcp.f32 %v3677_v44  ;;  %v3896_v44 = vld [vmem:[#allocation33_spill] sm:$0xff] }
 0x4b6   : > { %1797 = vxpose.xlu0.b32.cont [14/16] (narrow) %v1633_v48, 8  ;;  %1765 = vxpose.xlu1.b32.end [16/16] (narrow) %v1587_v29, 8  ;;  %v1640_v10 = vmul.f32 %v2596_v59, %v3886_v24  ;;  %v2598_v46 = vpop.eup %2597  ;;  %2617 = vrcp.f32 %v3672_v28 }
 0x4b7   : > { %v1641_v55 = vmul.f32 %v2598_v46, %v3887_v0  ;;  %v2600_v35 = vpop.eup %2599 }
 0x4b8   : > { %v1642_v51 = vmul.f32 %v2600_v35, %v3888_v22  ;;  %v2602_v36 = vpop.eup %2601 }
 0x4b9   : > { %v1643_v8 = vmul.f32 %v2602_v36, %v3889_v54  ;;  %v2604_v1 = vpop.eup %2603 }
 0x4ba   : > { %1798 = vxpose.xlu0.b32.cont [15/16] (narrow) %v1634_v26, 8  ;;  %1816 = vxpose.xlu1.b32.start [1/16] (narrow) %v1636_v11, 8  ;;  %v1644_v49 = vmul.f32 %v2604_v1, %v3890_v39  ;;  %v2606_v15 = vpop.eup %2605 }
 0x4bb   : > { %v1645_v42 = vmul.f32 %v2606_v15, %v3891_v63  ;;  %v2608_v23 = vpop.eup %2607 }
 0x4bc   : > { %v1646_v4 = vmul.f32 %v2608_v23, %v3892_v13  ;;  %v2610_v33 = vpop.eup %2609 }
 0x4bd   : > { %v1647_v20 = vmul.f32 %v2610_v33, %v3893_v5  ;;  %v2612_v62 = vpop.eup %2611 }
 0x4be   : > { %1799 = vxpose.xlu0.b32.end [16/16] (narrow) %v1635_v25, 8  ;;  %1817 = vxpose.xlu1.b32.cont [2/16] (narrow) %v1637_v47, 8  ;;  %v1648_v53 = vmul.f32 %v2612_v62, %v3894_v14  ;;  %v2614_v52 = vpop.eup %2613 }
 0x4bf   : > { %v1649_v41 = vmul.f32 %v2614_v52, %v3895_v37  ;;  %v2616_v30 = vpop.eup %2615 }
 0x4c0   : > { %v1650_v43 = vmul.f32 %v2616_v30, %v3896_v44  ;;  %v2618_v7 = vpop.eup %2617 }
 0x4c1   : > { %v1651_v61 = vmul.f32 %v2618_v7, %v3897_v9 }
 0x4c2   : > { %1818 = vxpose.xlu1.b32.cont [3/16] (narrow) %v1638_v57, 8  ;;  %v1734_v40 = vpop.trf.xlu0 }
 0x4c3   : > { %1782 = vst [vmem:[%s3395_s9 + $0x10] sm:$0xff] %v1734_v40 }
 0x4c6   : > { %1819 = vxpose.xlu1.b32.cont [4/16] (narrow) %v1639_v34, 8 }
 0x4ca   : > { %1820 = vxpose.xlu1.b32.cont [5/16] (narrow) %v1640_v10, 8 }
 0x4ce   : > { %1821 = vxpose.xlu1.b32.cont [6/16] (narrow) %v1641_v55, 8 }
 0x4d2   : > { %1822 = vxpose.xlu1.b32.cont [7/16] (narrow) %v1642_v51, 8 }
 0x4d6   : > { %1823 = vxpose.xlu1.b32.cont [8/16] (narrow) %v1643_v8, 8 }
 0x4da   : > { %1824 = vxpose.xlu1.b32.cont [9/16] (narrow) %v1644_v49, 8 }
 0x4de   : > { %1825 = vxpose.xlu1.b32.cont [10/16] (narrow) %v1645_v42, 8 }
 0x4e2   : > { %1826 = vxpose.xlu1.b32.cont [11/16] (narrow) %v1646_v4, 8 }
 0x4e6   : > { %1827 = vxpose.xlu1.b32.cont [12/16] (narrow) %v1647_v20, 8 }
 0x4ea   : > { %1828 = vxpose.xlu1.b32.cont [13/16] (narrow) %v1648_v53, 8 }
 0x4ee   : > { %1829 = vxpose.xlu1.b32.cont [14/16] (narrow) %v1649_v41, 8 }
 0x4f2   : > { %1830 = vxpose.xlu1.b32.cont [15/16] (narrow) %v1650_v43, 8 }
 0x4f6   : > { %1831 = vxpose.xlu1.b32.end [16/16] (narrow) %v1651_v61, 8 }
 0x4fa   : > { %v1766_v28 = vpop.trf.xlu1 }
 0x4fb   : > { %1783 = vst [vmem:[%s3395_s9 + $0x18] sm:$0xff] %v1766_v28 }
 0x502   : > { %v1800_v60 = vpop.trf.xlu0 }
 0x503   : > { %1848 = vst [vmem:[%s3395_s9 + $0x20] sm:$0xff] %v1800_v60 }
 0x53a   : > { %v1832_v38 = vpop.trf.xlu1 }
 0x53b   : > { %1849 = vst [vmem:[%s3395_s9 + $0x28] sm:$0xff] %v1832_v38 }
 0x53c   : > { %2632 = shalt.err (!%p2629_p3)
}
 0x53d   : > { %s2633_s21 = scalar_lea.hbm %s3734_s8, 768  ;;  %s2637_s29 = scalar_lea.hbm %s3787_s7, 1536 }
 0x53e   : > { %p2634_p4 = scmp.ne.s32.totalorder %s3734_s8, %s2633_s21  ;;  %p2638_p9 = scmp.lt.u32.totalorder %s3734_s8, %s3787_s7 }
 0x53f   : > { %p2639_p10 = scmp.lt.u32.totalorder %s2637_s29, %s2633_s21  ;;  %p2641_p12 = scmp.lt.u32.totalorder %s2633_s21, %s3734_s8 }
 0x540   : > { %p2635_p7 = pnand %p2634_p4, %p2765_p5 }
 0x541   : > { %p2640_p11 = por %p2639_p10, %p2638_p9 }
 0x542   : > { %p2636_p8 = pneg %p2635_p7 }
 0x543   : > { %p2642_p13 = por %p2641_p12, %p2640_p11 }
 0x545   : > { %p2643_p0 = pnand %p2642_p13, %p2636_p8 }
 0x547   : > { %2646 = shalt.err (!%p2643_p0)
}
 0x548   : > { %s2684_s15 = smov 256   ;;  %s2685_s16 = smov 512  }
 0x549   : > { %s2686_s18 = smov 16  }
 0x54a   : > { %2385 = dma.vmem_to_hbm [thread:$0]  (%p2765_p5), %s3729_s13, 768, %s3734_s8, %s3739_s17, %s2684_s15, %s2685_s16, %s2686_s18  }
 0x54b PF: > { %p2391_p1 = scmp.ge.s32.totalorder %s2681_s27, 2  ;;  %s1879_s28 = sand.u32 1, %s2669_s24  }
 0x54c   : > { %s1880_s19 = scalar_lea.sflag [#allocation3], %s1879_s28 }
 0x54d   : > { %p2388_p2 = pnand %p2391_p1, %p2769_p6 }
 0x54f   : > { %2664 = dma.done.wait (!%p2388_p2), %s1880_s19, 768  }
 0x550   : > { %2666 = vsyncadd (!%p2388_p2), %s1880_s19, 4294966528  ;;  %p17_p3 = scmp.ge.s32.totalorder %s2752_s30, 4   ;;  %s3898_s24 = smov %s2673_s25 }
 0x551   : > { %s3899_s25 = smov %s2677_s26  ;;  %s3900_s26 = smov %s2763_s10 }
 0x552   : > { %s3901_s27 = smov %s2752_s30  ;;  %19 = sbr.rel (!%p17_p3) target bundleno = 3 (0x3), region = 83 }
 0x559   :  { %1885 = vsyncpa [#allocation3], 1 }
 0x55a   :  { %1887 = vsyncpa [#allocation3 + $0x1], 1 }

</bundles_post_ra>
